<compile_context>
chip_gen: v5e
topology: v5e:2x2
jax: 0.10.0
libtpu: 0.0.40
codegen_flags: <defaults>
</compile_context>

<pallas_src>
import jax
import jax.numpy as jnp
from jax import lax
from jax.experimental import pallas as pl
from jax.experimental.pallas import tpu as pltpu

# ---------------- static configuration ----------------
B = 2
C_IN = 4
H = W = 7                      # spatial size at which the aux head is applied
NUM_CLASSES = 10
C_MID = 128
C_OUT = 768
POOL_K, POOL_S = 5, 2
HO = (H - POOL_K) // POOL_S + 1   # 2
WO = (W - POOL_K) // POOL_S + 1   # 2
NPOS = HO * WO                    # 4 pooled positions -> 2x2 map
KCOL = POOL_K * POOL_K * C_IN     # 100 im2col contraction depth
KPAD = 128                        # pad contraction depth to one lane tile
OUT_PAD = 128                     # lane-dense padded classifier output width
BN_EPS = 1e-5


def aux_head_kernel(xc_ref, wp_ref, gamma_ref, beta_ref, w2_ref, w3_ref, b3_ref, o_ref):
    # xc_ref: (NPOS*B, KPAD) im2col of x, rows position-major (row = p*B + b), zero-padded cols.
    # wp_ref: (KPAD, 128) replicated (and 1/25-scaled) 1x1-conv weight, zero-padded rows.

    # ReLU -> AvgPool(5,2) -> Conv1x1 fused into one MXU matmul.
    xr = jnp.maximum(xc_ref[...], 0.0)
    h1 = jnp.dot(xr, wp_ref[...], preferred_element_type=jnp.float32)      # (8, 128)

    # BatchNorm2d(128), training mode: stats over (batch, H, W) == all 8 rows, biased var.
    inv_n = 1.0 / float(B * NPOS)
    mean = jnp.sum(h1, axis=0, keepdims=True) * inv_n                      # (1, 128)
    d = h1 - mean
    var = jnp.sum(d * d, axis=0, keepdims=True) * inv_n                    # (1, 128)
    scale = lax.rsqrt(var + BN_EPS) * gamma_ref[...]                       # fold gamma into scale
    feat = jnp.maximum(d * scale + beta_ref[...], 0.0)                     # (8, 128), ReLU

    # 2x2 conv (128 -> 768) on the 2x2 map == sum over 4 positions of (B,128)@(128,768).
    fb = feat.astype(jnp.bfloat16)
    h2 = jnp.dot(fb[0:B, :], w2_ref[0], preferred_element_type=jnp.float32)
    for p in range(1, NPOS):
        h2 = h2 + jnp.dot(fb[p * B:(p + 1) * B, :], w2_ref[p],
                          preferred_element_type=jnp.float32)              # (B, 768)
    h2 = jnp.maximum(h2, 0.0)                                              # ReLU

    # classifier: Linear(768, num_classes), weights zero-padded to 128 output lanes.
    o_ref[...] = (jnp.dot(h2.astype(jnp.bfloat16), w3_ref[...],
                          preferred_element_type=jnp.float32) + b3_ref[...])


def aux_head_forward(x_nchw, params):
    """params: (conv1_w [128,C,1,1], bn_gamma [128], bn_beta [128],
                conv2_w [768,128,2,2], fc_w [NC,768], fc_b [NC])  (PyTorch layouts)."""
    conv1_w, bn_gamma, bn_beta, conv2_w, fc_w, fc_b = params
    Bx = x_nchw.shape[0]

    # ---- wrapper glue: layout plumbing & parameter preprocessing only ----
    x_nhwc = jnp.transpose(x_nchw, (0, 2, 3, 1))                           # NCHW -> NHWC

    # im2col of the 4 pooling windows (pure gather, no arithmetic); rows position-major
    # (row = p*B + b), columns ordered (kh, kw, cin); contraction axis padded 100 -> 128.
    cols = []
    for oh in range(HO):
        for ow in range(WO):
            win = x_nhwc[:, oh * POOL_S:oh * POOL_S + POOL_K,
                            ow * POOL_S:ow * POOL_S + POOL_K, :]           # (B,5,5,C)
            cols.append(win.reshape(Bx, KCOL))
    x_col = jnp.concatenate(cols, axis=0)                                  # (4*B, 100)
    x_col = jnp.pad(x_col, ((0, 0), (0, KPAD - KCOL)))                     # (8, 128)

    # 1x1 conv weight with the 1/25 AvgPool scale folded in, replicated per window tap.
    w1 = jnp.transpose(conv1_w[:, :, 0, 0], (1, 0))                        # (C_IN, 128)
    w_pool = jnp.tile(w1 * (1.0 / float(POOL_K * POOL_K)), (POOL_K * POOL_K, 1))  # (100,128)
    w_pool = jnp.pad(w_pool, ((0, KPAD - KCOL), (0, 0)))                   # (128, 128)

    g = bn_gamma.reshape(1, C_MID)
    b = bn_beta.reshape(1, C_MID)

    # conv2 OIHW (768,128,2,2) -> (4,128,768) bf16; slice p = kh*WO + kw matches row order.
    w2 = jnp.transpose(conv2_w, (2, 3, 1, 0)).reshape(NPOS, C_MID, C_OUT).astype(jnp.bfloat16)

    # classifier: (NC,768) -> (768, OUT_PAD) bf16 zero-padded for a lane-dense output.
    w3 = jnp.zeros((C_OUT, OUT_PAD), jnp.float32).at[:, :NUM_CLASSES].set(fc_w.T)
    w3 = w3.astype(jnp.bfloat16)
    b3 = jnp.zeros((1, OUT_PAD), jnp.float32).at[:, :NUM_CLASSES].set(fc_b)

    vmem = pl.BlockSpec(memory_space=pltpu.MemorySpace.VMEM)
    out_padded = pl.pallas_call(
        aux_head_kernel,
        out_shape=jax.ShapeDtypeStruct((Bx, OUT_PAD), jnp.float32),
        in_specs=[vmem] * 7,
        out_specs=vmem,
        cost_estimate=pl.CostEstimate(
            flops=2_240_000, transcendentals=128, bytes_accessed=1_056_000),
    )(x_col, w_pool, g, b, w2, w3, b3)
    return out_padded[:, :NUM_CLASSES]


def reference_forward(x, params):
    """Pure-JAX reference mirroring the PyTorch module (NCHW, f32 HIGHEST)."""
    conv1_w, bn_gamma, bn_beta, conv2_w, fc_w, fc_b = params
    x = jnp.maximum(x, 0.0)
    x = lax.reduce_window(x, 0.0, lax.add, (1, 1, POOL_K, POOL_K),
                          (1, 1, POOL_S, POOL_S), 'VALID') / float(POOL_K * POOL_K)
    x = lax.conv_general_dilated(x, conv1_w, (1, 1), 'VALID',
                                 dimension_numbers=('NCHW', 'OIHW', 'NCHW'),
                                 precision=lax.Precision.HIGHEST)
    mean = jnp.mean(x, axis=(0, 2, 3), keepdims=True)
    var = jnp.mean((x - mean) ** 2, axis=(0, 2, 3), keepdims=True)
    x = (x - mean) * lax.rsqrt(var + BN_EPS) * bn_gamma.reshape(1, -1, 1, 1) \
        + bn_beta.reshape(1, -1, 1, 1)
    x = jnp.maximum(x, 0.0)
    x = lax.conv_general_dilated(x, conv2_w, (1, 1), 'VALID',
                                 dimension_numbers=('NCHW', 'OIHW', 'NCHW'),
                                 precision=lax.Precision.HIGHEST)
    x = jnp.maximum(x, 0.0)
    x = x.reshape(x.shape[0], -1)
    return jnp.dot(x, fc_w.T, precision=lax.Precision.HIGHEST) + fc_b


if __name__ == "__main__":
    key = jax.random.PRNGKey(0)
    k1, k2, k3, k4, kx = jax.random.split(key, 5)

    # deterministic synthetic parameters (shapes from __init__; PyTorch layouts)
    conv1_w = jax.random.normal(k1, (C_MID, C_IN, 1, 1), jnp.float32) * 0.1
    conv2_w = jax.random.normal(k2, (C_OUT, C_MID, 2, 2), jnp.float32) * 0.05
    fc_w = jax.random.normal(k3, (NUM_CLASSES, C_OUT), jnp.float32) * 0.05
    fc_b = jax.random.normal(k4, (NUM_CLASSES,), jnp.float32) * 0.05
    bn_gamma = jnp.ones((C_MID,), jnp.float32)    # BatchNorm default init
    bn_beta = jnp.zeros((C_MID,), jnp.float32)
    params = (conv1_w, bn_gamma, bn_beta, conv2_w, fc_w, fc_b)

    x = jax.random.normal(kx, (B, C_IN, H, W), jnp.float32)                # NCHW like PyTorch

    out = aux_head_forward(x, params)
    out = jax.block_until_ready(out)

    ref = jax.block_until_ready(reference_forward(x, params))
    assert out.shape == (B, NUM_CLASSES)
    assert jnp.allclose(out, ref, atol=3e-2, rtol=3e-2), (
        f"mismatch: max abs diff {jnp.max(jnp.abs(out - ref))}")

    print("KERNEL_OK")
</pallas_src>

<mosaic_0001>
module attributes {stable_mosaic.version = 11 : i64} {
  func.func @aux_head_kernel(%arg0: memref<8x128xf32, #tpu.memory_space<vmem>>, %arg1: memref<128x128xf32, #tpu.memory_space<vmem>>, %arg2: memref<1x128xf32, #tpu.memory_space<vmem>>, %arg3: memref<1x128xf32, #tpu.memory_space<vmem>>, %arg4: memref<4x128x768xbf16, #tpu.memory_space<vmem>>, %arg5: memref<768x128xbf16, #tpu.memory_space<vmem>>, %arg6: memref<1x128xf32, #tpu.memory_space<vmem>>, %arg7: memref<2x128xf32, #tpu.memory_space<vmem>>) attributes {dimension_semantics = [], scalar_prefetch = 0 : i64, scratch_operands = 0 : i64, tpu.core_type = #tpu.core_type<tc>} {
    %c0 = arith.constant 0 : index
    %c0_0 = arith.constant 0 : index
    %0 = vector.load %arg0[%c0, %c0_0] : memref<8x128xf32, #tpu.memory_space<vmem>>, vector<8x128xf32>
    %cst = arith.constant 0.000000e+00 : f32
    %1 = vector.broadcast %cst : f32 to vector<8x128xf32>
    %2 = arith.maximumf %0, %1 : vector<8x128xf32>
    %c0_1 = arith.constant 0 : index
    %c0_2 = arith.constant 0 : index
    %3 = vector.load %arg1[%c0_1, %c0_2] : memref<128x128xf32, #tpu.memory_space<vmem>>, vector<128x128xf32>
    %cst_3 = arith.constant dense<0.000000e+00> : vector<8x128xf32>
    %4 = tpu.matmul %2, %3, %cst_3 {dimension_numbers = #tpu.dot_dimension_numbers<[1], [0], [0], [1], [0, 0, 1, 1], [], []>} : vector<8x128xf32>, vector<128x128xf32>, vector<8x128xf32> -> vector<8x128xf32>
    %cst_4 = arith.constant dense<0.000000e+00> : vector<128xf32>
    %5 = vector.multi_reduction <add>, %4, %cst_4 [0] : vector<8x128xf32> to vector<128xf32>
    %6 = vector.shape_cast %5 : vector<128xf32> to vector<1x128xf32>
    %cst_5 = arith.constant 1.250000e-01 : f32
    %7 = vector.broadcast %cst_5 : f32 to vector<1x128xf32>
    %8 = arith.mulf %6, %7 : vector<1x128xf32>
    %9 = vector.broadcast %8 : vector<1x128xf32> to vector<8x128xf32>
    %10 = arith.subf %4, %9 : vector<8x128xf32>
    %11 = arith.mulf %10, %10 : vector<8x128xf32>
    %cst_6 = arith.constant dense<0.000000e+00> : vector<128xf32>
    %12 = vector.multi_reduction <add>, %11, %cst_6 [0] : vector<8x128xf32> to vector<128xf32>
    %13 = vector.shape_cast %12 : vector<128xf32> to vector<1x128xf32>
    %cst_7 = arith.constant 1.250000e-01 : f32
    %14 = vector.broadcast %cst_7 : f32 to vector<1x128xf32>
    %15 = arith.mulf %13, %14 : vector<1x128xf32>
    %cst_8 = arith.constant 9.99999974E-6 : f32
    %16 = vector.broadcast %cst_8 : f32 to vector<1x128xf32>
    %17 = arith.addf %15, %16 : vector<1x128xf32>
    %18 = math.rsqrt %17 : vector<1x128xf32>
    %c0_9 = arith.constant 0 : index
    %c0_10 = arith.constant 0 : index
    %19 = vector.load %arg2[%c0_9, %c0_10] : memref<1x128xf32, #tpu.memory_space<vmem>>, vector<1x128xf32>
    %20 = arith.mulf %18, %19 : vector<1x128xf32>
    %21 = vector.broadcast %20 : vector<1x128xf32> to vector<8x128xf32>
    %22 = arith.mulf %10, %21 : vector<8x128xf32>
    %c0_11 = arith.constant 0 : index
    %c0_12 = arith.constant 0 : index
    %23 = vector.load %arg3[%c0_11, %c0_12] : memref<1x128xf32, #tpu.memory_space<vmem>>, vector<1x128xf32>
    %24 = vector.broadcast %23 : vector<1x128xf32> to vector<8x128xf32>
    %25 = arith.addf %22, %24 : vector<8x128xf32>
    %cst_13 = arith.constant 0.000000e+00 : f32
    %26 = vector.broadcast %cst_13 : f32 to vector<8x128xf32>
    %27 = arith.maximumf %25, %26 : vector<8x128xf32>
    %28 = arith.truncf %27 : vector<8x128xf32> to vector<8x128xbf16>
    %29 = vector.extract_strided_slice %28 {offsets = [0, 0], sizes = [2, 128], strides = [1, 1]} : vector<8x128xbf16> to vector<2x128xbf16>
    %c0_14 = arith.constant 0 : index
    %c0_15 = arith.constant 0 : index
    %c0_16 = arith.constant 0 : index
    %30 = vector.load %arg4[%c0_14, %c0_15, %c0_16] : memref<4x128x768xbf16, #tpu.memory_space<vmem>>, vector<1x128x768xbf16>
    %31 = vector.shape_cast %30 : vector<1x128x768xbf16> to vector<128x768xbf16>
    %cst_17 = arith.constant dense<0.000000e+00> : vector<2x768xf32>
    %32 = tpu.matmul %29, %31, %cst_17 {dimension_numbers = #tpu.dot_dimension_numbers<[1], [0], [0], [1], [0, 0, 1, 1], [], []>} : vector<2x128xbf16>, vector<128x768xbf16>, vector<2x768xf32> -> vector<2x768xf32>
    %33 = vector.extract_strided_slice %28 {offsets = [2, 0], sizes = [2, 128], strides = [1, 1]} : vector<8x128xbf16> to vector<2x128xbf16>
    %c1 = arith.constant 1 : index
    %c0_18 = arith.constant 0 : index
    %c0_19 = arith.constant 0 : index
    %34 = vector.load %arg4[%c1, %c0_18, %c0_19] : memref<4x128x768xbf16, #tpu.memory_space<vmem>>, vector<1x128x768xbf16>
    %35 = vector.shape_cast %34 : vector<1x128x768xbf16> to vector<128x768xbf16>
    %cst_20 = arith.constant dense<0.000000e+00> : vector<2x768xf32>
    %36 = tpu.matmul %33, %35, %cst_20 {dimension_numbers = #tpu.dot_dimension_numbers<[1], [0], [0], [1], [0, 0, 1, 1], [], []>} : vector<2x128xbf16>, vector<128x768xbf16>, vector<2x768xf32> -> vector<2x768xf32>
    %37 = arith.addf %32, %36 : vector<2x768xf32>
    %38 = vector.extract_strided_slice %28 {offsets = [4, 0], sizes = [2, 128], strides = [1, 1]} : vector<8x128xbf16> to vector<2x128xbf16>
    %c2 = arith.constant 2 : index
    %c0_21 = arith.constant 0 : index
    %c0_22 = arith.constant 0 : index
    %39 = vector.load %arg4[%c2, %c0_21, %c0_22] : memref<4x128x768xbf16, #tpu.memory_space<vmem>>, vector<1x128x768xbf16>
    %40 = vector.shape_cast %39 : vector<1x128x768xbf16> to vector<128x768xbf16>
    %cst_23 = arith.constant dense<0.000000e+00> : vector<2x768xf32>
    %41 = tpu.matmul %38, %40, %cst_23 {dimension_numbers = #tpu.dot_dimension_numbers<[1], [0], [0], [1], [0, 0, 1, 1], [], []>} : vector<2x128xbf16>, vector<128x768xbf16>, vector<2x768xf32> -> vector<2x768xf32>
    %42 = arith.addf %37, %41 : vector<2x768xf32>
    %43 = vector.extract_strided_slice %28 {offsets = [6, 0], sizes = [2, 128], strides = [1, 1]} : vector<8x128xbf16> to vector<2x128xbf16>
    %c3 = arith.constant 3 : index
    %c0_24 = arith.constant 0 : index
    %c0_25 = arith.constant 0 : index
    %44 = vector.load %arg4[%c3, %c0_24, %c0_25] : memref<4x128x768xbf16, #tpu.memory_space<vmem>>, vector<1x128x768xbf16>
    %45 = vector.shape_cast %44 : vector<1x128x768xbf16> to vector<128x768xbf16>
    %cst_26 = arith.constant dense<0.000000e+00> : vector<2x768xf32>
    %46 = tpu.matmul %43, %45, %cst_26 {dimension_numbers = #tpu.dot_dimension_numbers<[1], [0], [0], [1], [0, 0, 1, 1], [], []>} : vector<2x128xbf16>, vector<128x768xbf16>, vector<2x768xf32> -> vector<2x768xf32>
    %47 = arith.addf %42, %46 : vector<2x768xf32>
    %cst_27 = arith.constant 0.000000e+00 : f32
    %48 = vector.broadcast %cst_27 : f32 to vector<2x768xf32>
    %49 = arith.maximumf %47, %48 : vector<2x768xf32>
    %50 = arith.truncf %49 : vector<2x768xf32> to vector<2x768xbf16>
    %c0_28 = arith.constant 0 : index
    %c0_29 = arith.constant 0 : index
    %51 = vector.load %arg5[%c0_28, %c0_29] : memref<768x128xbf16, #tpu.memory_space<vmem>>, vector<768x128xbf16>
    %cst_30 = arith.constant dense<0.000000e+00> : vector<2x128xf32>
    %52 = tpu.matmul %50, %51, %cst_30 {dimension_numbers = #tpu.dot_dimension_numbers<[1], [0], [0], [1], [0, 0, 1, 1], [], []>} : vector<2x768xbf16>, vector<768x128xbf16>, vector<2x128xf32> -> vector<2x128xf32>
    %c0_31 = arith.constant 0 : index
    %c0_32 = arith.constant 0 : index
    %53 = vector.load %arg6[%c0_31, %c0_32] : memref<1x128xf32, #tpu.memory_space<vmem>>, vector<1x128xf32>
    %54 = vector.broadcast %53 : vector<1x128xf32> to vector<2x128xf32>
    %55 = arith.addf %52, %54 : vector<2x128xf32>
    %c0_33 = arith.constant 0 : index
    %c0_34 = arith.constant 0 : index
    %56 = vector.load %arg7[%c0_33, %c0_34] : memref<2x128xf32, #tpu.memory_space<vmem>>, vector<2x128xf32>
    tpu.vector_store %arg7[%c0_33, %c0_34], %55 {strides = array<i32>} : memref<2x128xf32, #tpu.memory_space<vmem>>, vector<2x128xf32>,
    return
  }
}

</mosaic_0001>

<bundles_post_ra>
// kernel: tpu_custom_call.1
= control target key start
LH: loop header
LB: loop body
LE: loop exit
PB: predicated region body
PF: predicated region fallthrough
CT: control target
= control target key end

     0   :  { %12 = vsyncpa [#allocation3], 0  ;;  %s3643_s0 = inlined_call_operand.hbm [shape: f32[8,128], index: 0, kind: input, shape index: {}]   ;;  %s3644_s1 = inlined_call_operand.hbm [shape: f32[128,128], index: 1, kind: input, shape index: {}]   ;;  %s3645_s2 = inlined_call_operand.vmem [shape: f32[1,128], index: 2, kind: input, shape index: {}]   ;;  %s3646_s3 = inlined_call_operand.vmem [shape: f32[1,128], index: 3, kind: input, shape index: {}]   ;;  %s3647_s4 = inlined_call_operand.hbm [shape: bf16[4,128,768], index: 4, kind: input, shape index: {}]   ;;  %s3648_s5 = inlined_call_operand.hbm [shape: bf16[768,128], index: 5, kind: input, shape index: {}]   ;;  %s3649_s6 = inlined_call_operand.vmem [shape: f32[1,128], index: 6, kind: input, shape index: {}]   ;;  %s3650_s7 = inlined_call_operand.hbm [shape: f32[2,128], index: 7, kind: output, shape index: {}]  }
   0x1   :  { %13 = vsyncpa [#allocation6], 0 }
   0x2   :  { %14 = vsyncpa [#allocation9], 0  ;;  %s31_s26 = sshll.u32 %s3644_s1, 4  ;;  %s32_s26 = int_to_ptr.hbm [resolvable:$true] %s31_s26 }
   0x3   :  { %15 = vsyncpa [#allocation4], 0  ;;  %s3493_s27 = smov [#allocation5]   ;;  %s21_s8 = sshll.u32 %s3643_s0, 4  ;;  %s22_s8 = int_to_ptr.hbm [resolvable:$true] %s21_s8 }
   0x4   :  { %s33_s28 = sshll.u32 %s3493_s27, 4  ;;  %s3494_s9 = smov 128   ;;  %s34_s28 = int_to_ptr.vmem [resolvable:$true] %s33_s28 }
   0x5   :  { %s3495_s10 = smov 8   ;;  %s3496_s11 = smov [#allocation2]  }
   0x6   :  { %39 = dma.hbm_to_vmem [thread:$0]  %s32_s26, 2048, %s34_s28, [#allocation6], %s3494_s9, %s3494_s9, %s3495_s10  }
   0x7   :  { %s23_s12 = sshll.u32 %s3496_s11, 4  ;;  %s48_s15 = sshll.u32 %s3647_s4, 4  ;;  %s24_s12 = int_to_ptr.vmem [resolvable:$true] %s23_s12  ;;  %s49_s15 = int_to_ptr.hbm [resolvable:$true] %s48_s15 }
   0x8   :  { %26 = dma.hbm_to_vmem [thread:$0]  %s22_s8, 128, %s24_s12, [#allocation3]  }
   0x9   :  { %s3497_s1 = smov [#allocation7]   ;;  %s61_s0 = sshll.u32 %s3648_s5, 4  ;;  %s62_s0 = int_to_ptr.hbm [resolvable:$true] %s61_s0 }
   0xa   :  { %s50_s16 = sshll.u32 %s3497_s1, 4  ;;  %s3498_s19 = smov 384   ;;  %s51_s16 = int_to_ptr.vmem [resolvable:$true] %s50_s16 }
   0xb   :  { %s3499_s20 = smov 24   ;;  %s3500_s21 = smov [#allocation8]  }
   0xc   :  { %56 = dma.hbm_to_vmem [thread:$0]  %s49_s15, 24576, %s51_s16, [#allocation6], %s3498_s19, %s3498_s19, %s3499_s20  }
   0xd   :  { %s63_s22 = sshll.u32 %s3500_s21, 4  ;;  %s3501_s23 = smov 64   ;;  %s64_s22 = int_to_ptr.vmem [resolvable:$true] %s63_s22 }
   0xe   :  { %s3502_s24 = smov 4  }
   0xf   :  { %69 = dma.hbm_to_vmem [thread:$0]  %s62_s0, 6144, %s64_s22, [#allocation9], %s3501_s23, %s3501_s23, %s3502_s24  }
  0x10   :  { %3485 = dma.done.wait [#allocation3], 128  }
  0x11   :  { %3486 = vsyncadd [#allocation3], 4294967168 }
  0x12   :  { %3487 = dma.done.wait [#allocation6], 26624  }
  0x13   :  { %3488 = vsyncadd [#allocation6], 4294940672 }
  0x14   :  { %3489 = dma.done.wait [#allocation9], 6144  }
  0x15   :  { %3490 = vsyncadd [#allocation9], 4294961152  ;;  %v105_v0 = vld [vmem:[#allocation5 + $0x78] sm:$0xff]  ;;  %v104_v1 = vld [vmem:[#allocation5 + $0x70] sm:$0xff]  ;;  %s3503_s27 = smov [#allocation10]   ;;  %s2138_s8 = sshll.u32 %s3650_s7, 4  ;;  %s2139_s8 = int_to_ptr.hbm [resolvable:$true] %s2138_s8 }
  0x16   :  { %106 = vmatpush.msra.mxu0 %v105_v0  ;;  %v103_v2 = vld [vmem:[#allocation5 + $0x68] sm:$0xff]  ;;  %v102_v3 = vld [vmem:[#allocation5 + $0x60] sm:$0xff]  ;;  %v101_v4 = vld [vmem:[#allocation5 + $0x58] sm:$0xff]  ;;  %s2136_s28 = sshll.u32 %s3503_s27, 4  ;;  %s2137_s28 = int_to_ptr.vmem [resolvable:$true] %s2136_s28 }
  0x17   :  { %v100_v5 = vld [vmem:[#allocation5 + $0x50] sm:$0xff]  ;;  %v99_v6 = vld [vmem:[#allocation5 + $0x48] sm:$0xff]  ;;  %v98_v7 = vld [vmem:[#allocation5 + $0x40] sm:$0xff] }
  0x18   :  { %107 = vmatpush.msra.mxu0 %v104_v1  ;;  %v97_v8 = vld [vmem:[#allocation5 + $0x38] sm:$0xff]  ;;  %v96_v9 = vld [vmem:[#allocation5 + $0x30] sm:$0xff]  ;;  %v95_v10 = vld [vmem:[#allocation5 + $0x28] sm:$0xff] }
  0x19   :  { %v94_v11 = vld [vmem:[#allocation5 + $0x20] sm:$0xff]  ;;  %v93_v12 = vld [vmem:[#allocation5 + $0x18] sm:$0xff]  ;;  %v92_v13 = vld [vmem:[#allocation5 + $0x10] sm:$0xff] }
  0x1a   :  { %108 = vmatpush.msra.mxu0 %v103_v2  ;;  %v88_v14 = vld [vmem:[#allocation2] sm:$0xff]  ;;  %v91_v15 = vld [vmem:[#allocation5 + $0x8] sm:$0xff]  ;;  %v90_v16 = vld [vmem:[#allocation5] sm:$0xff] }
  0x1b   :  { %v89_v17 = vmax.f32 %v88_v14, 0.0  ;;  %v2320_v18 = vld [vmem:[#allocation7 + $0x2d0] sm:$0xf]  ;;  %v3203_v19 = vld [vmem:[#allocation7 + $0x2e4] sm:$0xf0] }
  0x1c   :  { %109 = vmatpush.msra.mxu0 %v102_v3  ;;  %v3200_v20 = vld [vmem:[#allocation7 + $0x2d4] sm:$0xf]  ;;  %v2321_v21 = vor.u32 %v3203_v19, %v2320_v18  ;;  %v2322_v22 = vld [vmem:[#allocation7 + $0x2e8] sm:$0xf0]  ;;  %v2328_v23 = vld [vmem:[#allocation7 + $0x2d8] sm:$0xf] }
  0x1d   :  { %v3204_v24 = vld [vmem:[#allocation7 + $0x2ec] sm:$0xf0]  ;;  %v2325_v25 = vor.u32 %v3200_v20, %v2322_v22  ;;  %v3201_v27 = vld [vmem:[#allocation7 + $0x2dc] sm:$0xf]  ;;  %v2330_v28 = vld [vmem:[#allocation7 + $0x2f0] sm:$0xf0] }
  0x1e   :  { %110 = vmatpush.msra.mxu0 %v101_v4  ;;  %v2329_v26 = vor.u32 %v3204_v24, %v2328_v23  ;;  %506 = vmatpush.bf16.msra.mxu1 %v2321_v21  ;;  %v2333_v29 = vor.u32 %v3201_v27, %v2330_v28  ;;  %v2296_v30 = vld [vmem:[#allocation7 + $0x2a0] sm:$0xf]  ;;  %v3197_v31 = vld [vmem:[#allocation7 + $0x2b4] sm:$0xf0]  ;;  %v3194_v32 = vld [vmem:[#allocation7 + $0x2a4] sm:$0xf] }
  0x1f   :  { %519 = vmatpush.bf16.msra.mxu2 %v2325_v25  ;;  %v2297_v33 = vor.u32 %v3197_v31, %v2296_v30  ;;  %v2298_v34 = vld [vmem:[#allocation7 + $0x2b8] sm:$0xf0]  ;;  %v2304_v35 = vld [vmem:[#allocation7 + $0x2a8] sm:$0xf]  ;;  %v3198_v36 = vld [vmem:[#allocation7 + $0x2bc] sm:$0xf0] }
  0x20   :  { %111 = vmatpush.msra.mxu0 %v100_v5  ;;  %532 = vmatpush.bf16.msra.mxu3 %v2329_v26  ;;  %v2301_v37 = vor.u32 %v3194_v32, %v2298_v34  ;;  %v2305_v38 = vor.u32 %v3198_v36, %v2304_v35  ;;  %v3195_v39 = vld [vmem:[#allocation7 + $0x2ac] sm:$0xf]  ;;  %v2306_v40 = vld [vmem:[#allocation7 + $0x2c0] sm:$0xf0]  ;;  %v2272_v42 = vld [vmem:[#allocation7 + $0x270] sm:$0xf] }
  0x21   :  { %v2309_v41 = vor.u32 %v3195_v39, %v2306_v40  ;;  %v3191_v43 = vld [vmem:[#allocation7 + $0x284] sm:$0xf0]  ;;  %v3188_v44 = vld [vmem:[#allocation7 + $0x274] sm:$0xf]  ;;  %v2274_v46 = vld [vmem:[#allocation7 + $0x288] sm:$0xf0] }
  0x22   :  { %112 = vmatpush.msra.mxu0 %v99_v6  ;;  %507 = vmatpush.bf16.msra.mxu1 %v2297_v33  ;;  %v2273_v45 = vor.u32 %v3191_v43, %v2272_v42  ;;  %v2280_v47 = vld [vmem:[#allocation7 + $0x278] sm:$0xf]  ;;  %v3192_v48 = vld [vmem:[#allocation7 + $0x28c] sm:$0xf0]  ;;  %v2277_v49 = vor.u32 %v3188_v44, %v2274_v46  ;;  %v3189_v51 = vld [vmem:[#allocation7 + $0x27c] sm:$0xf] }
  0x23   :  { %520 = vmatpush.bf16.msra.mxu2 %v2301_v37  ;;  %v2281_v50 = vor.u32 %v3192_v48, %v2280_v47  ;;  %v2282_v52 = vld [vmem:[#allocation7 + $0x290] sm:$0xf0]  ;;  %v2248_v54 = vld [vmem:[#allocation7 + $0x240] sm:$0xf]  ;;  %v3185_v55 = vld [vmem:[#allocation7 + $0x254] sm:$0xf0] }
  0x24   :  { %113 = vmatpush.msra.mxu0 %v98_v7  ;;  %533 = vmatpush.bf16.msra.mxu3 %v2305_v38  ;;  %v2285_v53 = vor.u32 %v3189_v51, %v2282_v52  ;;  %v3182_v56 = vld [vmem:[#allocation7 + $0x244] sm:$0xf]  ;;  %v2249_v57 = vor.u32 %v3185_v55, %v2248_v54  ;;  %v2250_v58 = vld [vmem:[#allocation7 + $0x258] sm:$0xf0]  ;;  %v2256_v59 = vld [vmem:[#allocation7 + $0x248] sm:$0xf] }
  0x25   :  { %v3186_v60 = vld [vmem:[#allocation7 + $0x25c] sm:$0xf0]  ;;  %v2253_v61 = vor.u32 %v3182_v56, %v2250_v58  ;;  %v3183_v63 = vld [vmem:[#allocation7 + $0x24c] sm:$0xf]  ;;  %v2258_v0 = vld [vmem:[#allocation7 + $0x260] sm:$0xf0] }
  0x26   :  { %114 = vmatpush.msra.mxu0 %v97_v8  ;;  %508 = vmatpush.bf16.msra.mxu1 %v2273_v45  ;;  %v2257_v62 = vor.u32 %v3186_v60, %v2256_v59  ;;  %v2261_v1 = vor.u32 %v3183_v63, %v2258_v0  ;;  %v2224_v2 = vld [vmem:[#allocation7 + $0x210] sm:$0xf]  ;;  %v3179_v3 = vld [vmem:[#allocation7 + $0x224] sm:$0xf0]  ;;  %v3176_v4 = vld [vmem:[#allocation7 + $0x214] sm:$0xf] }
  0x27   :  { %521 = vmatpush.bf16.msra.mxu2 %v2277_v49  ;;  %v2225_v5 = vor.u32 %v3179_v3, %v2224_v2  ;;  %v2226_v6 = vld [vmem:[#allocation7 + $0x228] sm:$0xf0]  ;;  %v2232_v7 = vld [vmem:[#allocation7 + $0x218] sm:$0xf]  ;;  %v3180_v8 = vld [vmem:[#allocation7 + $0x22c] sm:$0xf0] }
  0x28   :  { %115 = vmatpush.msra.mxu0 %v96_v9  ;;  %534 = vmatpush.bf16.msra.mxu3 %v2281_v50  ;;  %v2229_v9 = vor.u32 %v3176_v4, %v2226_v6  ;;  %v2200_v14 = vld [vmem:[#allocation7 + $0x1e0] sm:$0xf]  ;;  %v2202_v18 = vld [vmem:[#allocation7 + $0x1f8] sm:$0xf0]  ;;  %v2208_v19 = vld [vmem:[#allocation7 + $0x1e8] sm:$0xf] }
  0x29   :  { %v3174_v20 = vld [vmem:[#allocation7 + $0x1fc] sm:$0xf0]  ;;  %v3171_v24 = vld [vmem:[#allocation7 + $0x1ec] sm:$0xf]  ;;  %v2210_v25 = vld [vmem:[#allocation7 + $0x200] sm:$0xf0] }
  0x2a   :  { %116 = vmatpush.msra.mxu0 %v95_v10  ;;  %509 = vmatpush.bf16.msra.mxu1 %v2249_v57  ;;  %v2233_v10 = vor.u32 %v3180_v8, %v2232_v7  ;;  %v2209_v23 = vor.u32 %v3174_v20, %v2208_v19  ;;  %v2213_v27 = vor.u32 %v3171_v24, %v2210_v25  ;;  %v2176_v28 = vld [vmem:[#allocation7 + $0x1b0] sm:$0xf]  ;;  %v3164_v30 = vld [vmem:[#allocation7 + $0x1b4] sm:$0xf]  ;;  %v2178_v33 = vld [vmem:[#allocation7 + $0x1c8] sm:$0xf0] }
  0x2b   :  { %522 = vmatpush.bf16.msra.mxu2 %v2253_v61  ;;  %v2184_v34 = vld [vmem:[#allocation7 + $0x1b8] sm:$0xf]  ;;  %v3168_v35 = vld [vmem:[#allocation7 + $0x1cc] sm:$0xf0]  ;;  %v2181_v36 = vor.u32 %v3164_v30, %v2178_v33  ;;  %v3165_v38 = vld [vmem:[#allocation7 + $0x1bc] sm:$0xf] }
  0x2c   :  { %117 = vmatpush.msra.mxu0 %v94_v11  ;;  %535 = vmatpush.bf16.msra.mxu3 %v2257_v62  ;;  %v3177_v11 = vld [vmem:[#allocation7 + $0x21c] sm:$0xf]  ;;  %v2185_v37 = vor.u32 %v3168_v35, %v2184_v34  ;;  %v2186_v39 = vld [vmem:[#allocation7 + $0x1d0] sm:$0xf0]  ;;  %v2152_v42 = vld [vmem:[#allocation7 + $0x180] sm:$0xf] }
  0x2d   :  { %v3161_v43 = vld [vmem:[#allocation7 + $0x194] sm:$0xf0]  ;;  %v3158_v44 = vld [vmem:[#allocation7 + $0x184] sm:$0xf]  ;;  %v2154_v47 = vld [vmem:[#allocation7 + $0x198] sm:$0xf0] }
  0x2e   :  { %118 = vmatpush.msra.mxu0 %v93_v12  ;;  %v2234_v12 = vld [vmem:[#allocation7 + $0x230] sm:$0xf0]  ;;  %510 = vmatpush.bf16.msra.mxu1 %v2225_v5  ;;  %v2153_v46 = vor.u32 %v3161_v43, %v2152_v42  ;;  %v2160_v48 = vld [vmem:[#allocation7 + $0x188] sm:$0xf]  ;;  %v3162_v49 = vld [vmem:[#allocation7 + $0x19c] sm:$0xf0]  ;;  %v2157_v50 = vor.u32 %v3158_v44, %v2154_v47 }
  0x2f   :  { %523 = vmatpush.bf16.msra.mxu2 %v2229_v9  ;;  %v2161_v51 = vor.u32 %v3162_v49, %v2160_v48  ;;  %v3159_v52 = vld [vmem:[#allocation7 + $0x18c] sm:$0xf]  ;;  %v2336_v54 = vld [vmem:[#allocation7 + $0x2e0] sm:$0xf]  ;;  %v3205_v57 = vld [vmem:[#allocation7 + $0x2f4] sm:$0xf0] }
  0x30   :  { %119 = vmatpush.msra.mxu0 %v92_v13  ;;  %v2237_v13 = vor.u32 %v3177_v11, %v2234_v12  ;;  %536 = vmatpush.bf16.msra.mxu3 %v2233_v10  ;;  %v3202_v58 = vld [vmem:[#allocation7 + $0x2e4] sm:$0xf]  ;;  %v2337_v59 = vor.u32 %v3205_v57, %v2336_v54  ;;  %v2338_v60 = vld [vmem:[#allocation7 + $0x2f8] sm:$0xf0]  ;;  %v2512_v61 = vld [vmem:[#allocation7 + $0x150] sm:$0xf] }
  0x31   :  { %v3155_v62 = vld [vmem:[#allocation7 + $0x164] sm:$0xf0]  ;;  %v2341_v0 = vor.u32 %v3202_v58, %v2338_v60  ;;  %v3152_v2 = vld [vmem:[#allocation7 + $0x154] sm:$0xf]  ;;  %v2514_v3 = vld [vmem:[#allocation7 + $0x168] sm:$0xf0] }
  0x32   :  { %120 = vmatpush.msra.mxu0 %v91_v15  ;;  %v3173_v15 = vld [vmem:[#allocation7 + $0x1f4] sm:$0xf0]  ;;  %v2312_v4 = vld [vmem:[#allocation7 + $0x2b0] sm:$0xf]  ;;  %v2517_v5 = vor.u32 %v3152_v2, %v2514_v3  ;;  %v3199_v6 = vld [vmem:[#allocation7 + $0x2c4] sm:$0xf0] }
  0x33   :  { %v3196_v7 = vld [vmem:[#allocation7 + $0x2b4] sm:$0xf]  ;;  %v2314_v8 = vld [vmem:[#allocation7 + $0x2c8] sm:$0xf0]  ;;  %v2313_v10 = vor.u32 %v3199_v6, %v2312_v4  ;;  %v2488_v12 = vld [vmem:[#allocation7 + $0x120] sm:$0xf] }
  0x34   :  { %121 = vmatpush.msra.mxu0 %v90_v16  ;;  %v3170_v16 = vld [vmem:[#allocation7 + $0x1e4] sm:$0xf]  ;;  %537 = vmatpush.bf16.msra.mxu3 %v2209_v23  ;;  %v2317_v11 = vor.u32 %v3196_v7, %v2314_v8  ;;  %v2288_v19 = vld [vmem:[#allocation7 + $0x280] sm:$0xf]  ;;  %v3193_v20 = vld [vmem:[#allocation7 + $0x294] sm:$0xf0] }
  0x35   :  { %122 = vmatmul.f32.vlgmr.msra.gmra.mxu0 %v89_v17  ;;  %v2201_v17 = vor.u32 %v3173_v15, %v2200_v14  ;;  %v2205_v22 = vor.u32 %v3170_v16, %v2202_v18  ;;  %v3146_v15 = vld [vmem:[#allocation7 + $0x124] sm:$0xf]  ;;  %v2490_v16 = vld [vmem:[#allocation7 + $0x138] sm:$0xf0]  ;;  %v2289_v23 = vor.u32 %v3193_v20, %v2288_v19  ;;  %v2464_v25 = vld [vmem:[#allocation7 + $0xf0] sm:$0xf] }
  0x36   :  { %545 = vmatpush.bf16.msrb.mxu0 %v2333_v29  ;;  %v3167_v29 = vld [vmem:[#allocation7 + $0x1c4] sm:$0xf0]  ;;  %v2493_v18 = vor.u32 %v3146_v15, %v2490_v16  ;;  %v2290_v24 = vld [vmem:[#allocation7 + $0x298] sm:$0xf0]  ;;  %v3140_v30 = vld [vmem:[#allocation7 + $0xf4] sm:$0xf] }
  0x37   :  { %511 = vmatpush.bf16.msra.mxu1 %v2201_v17  ;;  %524 = vmatpush.bf16.msra.mxu2 %v2205_v22  ;;  %v2177_v32 = vor.u32 %v3167_v29, %v2176_v28  ;;  %v3190_v22 = vld [vmem:[#allocation7 + $0x284] sm:$0xf]  ;;  %v2264_v33 = vld [vmem:[#allocation7 + $0x250] sm:$0xf]  ;;  %v3187_v34 = vld [vmem:[#allocation7 + $0x264] sm:$0xf0] }
  0x38   :  { %538 = vmatpush.bf16.msra.mxu3 %v2185_v37  ;;  %v2293_v28 = vor.u32 %v3190_v22, %v2290_v24  ;;  %v2265_v35 = vor.u32 %v3187_v34, %v2264_v33  ;;  %v2266_v37 = vld [vmem:[#allocation7 + $0x268] sm:$0xf0]  ;;  %v3134_v42 = vld [vmem:[#allocation7 + $0xc4] sm:$0xf]  ;;  %v2442_v44 = vld [vmem:[#allocation7 + $0xd8] sm:$0xf0] }
  0x39   :  { %v2240_v47 = vld [vmem:[#allocation7 + $0x220] sm:$0xf]  ;;  %v3181_v48 = vld [vmem:[#allocation7 + $0x234] sm:$0xf0]  ;;  %v2418_v58 = vld [vmem:[#allocation7 + $0xa8] sm:$0xf0] }
  0x3a   :  { %546 = vmatpush.bf16.msrb.mxu0 %v2309_v41  ;;  %v2189_v41 = vor.u32 %v3165_v38, %v2186_v39  ;;  %v2241_v49 = vor.u32 %v3181_v48, %v2240_v47  ;;  %v2392_v2 = vld [vmem:[#allocation7 + $0x60] sm:$0xf]  ;;  %v3122_v6 = vld [vmem:[#allocation7 + $0x64] sm:$0xf]  ;;  %v2394_v7 = vld [vmem:[#allocation7 + $0x78] sm:$0xf0] }
  0x3b   :  { %512 = vmatpush.bf16.msra.mxu1 %v2177_v32  ;;  %525 = vmatpush.bf16.msra.mxu2 %v2181_v36  ;;  %v3184_v36 = vld [vmem:[#allocation7 + $0x254] sm:$0xf]  ;;  %v2194_v15 = vld [vmem:[#allocation7 + $0x1d8] sm:$0xf0]  ;;  %v2368_v16 = vld [vmem:[#allocation7 + $0x30] sm:$0xf] }
  0x3c   :  { %539 = vmatpush.bf16.msra.mxu3 %v2161_v51  ;;  %v2269_v39 = vor.u32 %v3184_v36, %v2266_v37  ;;  %v2242_v51 = vld [vmem:[#allocation7 + $0x238] sm:$0xf0]  ;;  %v3119_v20 = vld [vmem:[#allocation7 + $0x44] sm:$0xf0]  ;;  %v3116_v22 = vld [vmem:[#allocation7 + $0x34] sm:$0xf] }
  0x3d   :  { %v2370_v24 = vld [vmem:[#allocation7 + $0x48] sm:$0xf0]  ;;  %v2346_v33 = vld [vmem:[#allocation7 + $0x18] sm:$0xf0]  ;;  %v3361_v47 = vld [vmem:[%s3646_s3] ss:$0 sm:$0xff] }
  0x3e   :  { %547 = vmatpush.bf16.msrb.mxu0 %v2285_v53  ;;  %v2162_v53 = vld [vmem:[#allocation7 + $0x1a0] sm:$0xf0] }
  0x3f   :  { %513 = vmatpush.bf16.msra.mxu1 %v2153_v46  ;;  %v2165_v56 = vor.u32 %v3159_v52, %v2162_v53  ;;  %526 = vmatpush.bf16.msra.mxu2 %v2157_v50  ;;  %v2445_v46 = vor.u32 %v3134_v42, %v2442_v44  ;;  %v3178_v50 = vld [vmem:[#allocation7 + $0x224] sm:$0xf]  ;;  %v2416_v52 = vld [vmem:[#allocation7 + $0x90] sm:$0xf] }
  0x40   :  { %v2245_v54 = vor.u32 %v3178_v50, %v2242_v51 }
  0x42   :  { %548 = vmatpush.bf16.msrb.mxu0 %v2261_v1  ;;  %v2513_v1 = vor.u32 %v3155_v62, %v2512_v61  ;;  %v2216_v61 = vld [vmem:[#allocation7 + $0x1f0] sm:$0xf]  ;;  %v3175_v62 = vld [vmem:[#allocation7 + $0x204] sm:$0xf0] }
  0x43   :  { %558 = vmatpush.bf16.msrb.mxu1 %v2337_v59  ;;  %571 = vmatpush.bf16.msrb.mxu2 %v2341_v0  ;;  %v3172_v0 = vld [vmem:[#allocation7 + $0x1f4] sm:$0xf] }
  0x44   :  { %824 = vmatpush.bf16.msrb.mxu3 %v2513_v1  ;;  %v2218_v1 = vld [vmem:[#allocation7 + $0x208] sm:$0xf0] }
  0x45   :  { %v2221_v4 = vor.u32 %v3172_v0, %v2218_v1  ;;  %v2496_v0 = vld [vmem:[#allocation7 + $0x128] sm:$0xf]  ;;  %v3150_v1 = vld [vmem:[#allocation7 + $0x13c] sm:$0xf0] }
  0x46   :  { %549 = vmatpush.bf16.msrb.mxu0 %v2237_v13  ;;  %v3149_v13 = vld [vmem:[#allocation7 + $0x134] sm:$0xf0] }
  0x47   :  { %v2489_v14 = vor.u32 %v3149_v13, %v2488_v12  ;;  %559 = vmatpush.bf16.msrb.mxu1 %v2313_v10  ;;  %572 = vmatpush.bf16.msrb.mxu2 %v2317_v11  ;;  %v2192_v11 = vld [vmem:[#allocation7 + $0x1c0] sm:$0xf]  ;;  %v3169_v12 = vld [vmem:[#allocation7 + $0x1d4] sm:$0xf0] }
  0x48   :  { %v2193_v13 = vor.u32 %v3169_v12, %v2192_v11  ;;  %v2472_v12 = vld [vmem:[#allocation7 + $0xf8] sm:$0xf] }
  0x49   :  { %825 = vmatpush.bf16.msrb.mxu3 %v2489_v14  ;;  %v3166_v14 = vld [vmem:[#allocation7 + $0x1c4] sm:$0xf] }
  0x4a   :  { %550 = vmatpush.bf16.msrb.mxu0 %v2213_v27  ;;  %v2197_v19 = vor.u32 %v3166_v14, %v2194_v15 }
  0x4b   :  { %560 = vmatpush.bf16.msrb.mxu1 %v2289_v23  ;;  %573 = vmatpush.bf16.msrb.mxu2 %v2293_v28  ;;  %v2369_v23 = vor.u32 %v3119_v20, %v2368_v16  ;;  %v3160_v28 = vld [vmem:[#allocation7 + $0x194] sm:$0xf]  ;;  %v3141_v16 = vld [vmem:[#allocation7 + $0xfc] sm:$0xf]  ;;  %v3145_v20 = vld [vmem:[#allocation7 + $0x114] sm:$0xf0] }
  0x4e   :  { %551 = vmatpush.bf16.msrb.mxu0 %v2189_v41  ;;  %v3137_v41 = vld [vmem:[#allocation7 + $0xd4] sm:$0xf0] }
  0x4f   :  { %561 = vmatpush.bf16.msrb.mxu1 %v2265_v35  ;;  %574 = vmatpush.bf16.msrb.mxu2 %v2269_v39 }
  0x52   :  { %552 = vmatpush.bf16.msrb.mxu0 %v2165_v56  ;;  %v3128_v56 = vld [vmem:[#allocation7 + $0x94] sm:$0xf] }
  0x53   :  { %v2421_v60 = vor.u32 %v3128_v56, %v2418_v58  ;;  %562 = vmatpush.bf16.msrb.mxu1 %v2241_v49  ;;  %575 = vmatpush.bf16.msrb.mxu2 %v2245_v54  ;;  %v3156_v54 = vld [vmem:[#allocation7 + $0x16c] sm:$0xf0]  ;;  %v2522_v56 = vld [vmem:[#allocation7 + $0x170] sm:$0xf0] }
  0x56   :  { %837 = vmatpush.bf16.msra.mxu0 %v2517_v5  ;;  %v3125_v5 = vld [vmem:[#allocation7 + $0x74] sm:$0xf0] }
  0x57   :  { %v2393_v8 = vor.u32 %v3125_v5, %v2392_v2  ;;  %576 = vmatpush.bf16.msrb.mxu2 %v2221_v4  ;;  %v3147_v4 = vld [vmem:[#allocation7 + $0x12c] sm:$0xf]  ;;  %v2498_v5 = vld [vmem:[#allocation7 + $0x140] sm:$0xf0] }
  0x58   :  { %v2501_v11 = vor.u32 %v3147_v4, %v2498_v5  ;;  %v2378_v4 = vld [vmem:[#allocation7 + $0x50] sm:$0xf0]  ;;  %v3121_v5 = vld [vmem:[#allocation7 + $0x54] sm:$0xf0] }
  0x5a   :  { %838 = vmatpush.bf16.msra.mxu0 %v2493_v18 }
  0x5b   :  { %577 = vmatpush.bf16.msrb.mxu2 %v2197_v19  ;;  %v2480_v19 = vld [vmem:[#allocation7 + $0x100] sm:$0xf] }
  0xb2   :  { %v3556_v21 = vpop.f32.mrf.mxu0 }
  0xb3   :  { %v126_v26 = vrot.slane %v3556_v21, 4 }
  0xb5   :  { %v127_v31 = vadd.f32 %v126_v26, %v3556_v21  ;;  %v3143_v26 = vld [vmem:[#allocation7 + $0x104] sm:$0xf0] }
  0xb6   :  { %v2465_v29 = vor.u32 %v3143_v26, %v2464_v25  ;;  %v2168_v25 = vld [vmem:[#allocation7 + $0x190] sm:$0xf]  ;;  %v3163_v26 = vld [vmem:[#allocation7 + $0x1a4] sm:$0xf0] }
  0xb7   :  { %v128_v40 = vrot.slane %v127_v31, 2 }
  0xb8   :  { %826 = vmatpush.bf16.msrb.mxu3 %v2465_v29  ;;  %v2170_v29 = vld [vmem:[#allocation7 + $0x1a8] sm:$0xf0] }
  0xb9   :  { %v129_v45 = vadd.f32 %v128_v40, %v127_v31  ;;  %v2466_v31 = vld [vmem:[#allocation7 + $0x108] sm:$0xf0]  ;;  %v2440_v40 = vld [vmem:[#allocation7 + $0xc0] sm:$0xf]  ;;  %v2173_v34 = vor.u32 %v3160_v28, %v2170_v29  ;;  %v2481_v28 = vor.u32 %v3145_v20, %v2480_v19  ;;  %v3112_v19 = vld [vmem:[#allocation7 + $0x14] sm:$0xf] }
  0xba   :  { %v2441_v43 = vor.u32 %v3137_v41, %v2440_v40  ;;  %v2362_v20 = vld [vmem:[#allocation7 + $0x28] sm:$0xf0] }
  0xbb   :  { %v130_v55 = vrot.slane %v129_v45, 1  ;;  %578 = vmatpush.bf16.msrb.mxu2 %v2173_v34  ;;  %v2458_v34 = vld [vmem:[#allocation7 + $0xe8] sm:$0xf0] }
  0xbc   :  { %827 = vmatpush.bf16.msrb.mxu3 %v2441_v43  ;;  %v153_v43 = vld [vmem:[%s3645_s2] sm:$0x1] }
  0xbd   :  { %v131_v63 = vadd.f32 %v130_v55, %v129_v45  ;;  %v3131_v55 = vld [vmem:[#allocation7 + $0xa4] sm:$0xf0] }
  0xbe   :  { %v2417_v57 = vor.u32 %v3131_v55, %v2416_v52  ;;  %v3153_v55 = vld [vmem:[#allocation7 + $0x15c] sm:$0xf] }
  0xbf   :  { %v132_v9 = vmul.f32 0.125, %v131_v63  ;;  %v2217_v63 = vor.u32 %v3175_v62, %v2216_v61  ;;  %v2530_v61 = vld [vmem:[#allocation7 + $0x178] sm:$0xf0] }
  0xc0   :  { %828 = vmatpush.bf16.msrb.mxu3 %v2417_v57  ;;  %v2528_v57 = vld [vmem:[#allocation7 + $0x160] sm:$0xf] }
  0xc1   :  { %v3561_v17 = vsub.f32 %v3556_v21, %v132_v9  ;;  %v2469_v21 = vor.u32 %v3140_v30, %v2466_v31  ;;  %v2397_v9 = vor.u32 %v3122_v6, %v2394_v7  ;;  %563 = vmatpush.bf16.msrb.mxu1 %v2217_v63  ;;  %v2344_v30 = vld [vmem:[#allocation7] sm:$0xf]  ;;  %v2169_v31 = vor.u32 %v3163_v26, %v2168_v25  ;;  %v2504_v6 = vld [vmem:[#allocation7 + $0x130] sm:$0xf]  ;;  %v3151_v7 = vld [vmem:[#allocation7 + $0x144] sm:$0xf0] }
  0xc2   :  { %v2525_v63 = vor.u32 %v3153_v55, %v2522_v56  ;;  %v2505_v14 = vor.u32 %v3151_v7, %v2504_v6  ;;  %v2448_v26 = vld [vmem:[#allocation7 + $0xc8] sm:$0xf]  ;;  %v2402_v55 = vld [vmem:[#allocation7 + $0x80] sm:$0xf0]  ;;  %v2408_v56 = vld [vmem:[#allocation7 + $0x70] sm:$0xf] }
  0xc3   :  { %v134_v27 = vmul.f32 %v3561_v17, %v3561_v17  ;;  %839 = vmatpush.bf16.msra.mxu0 %v2469_v21  ;;  %v3113_v21 = vld [vmem:[#allocation7 + $0x14] sm:$0xf0]  ;;  %v3118_v6 = vld [vmem:[#allocation7 + $0x44] sm:$0xf]  ;;  %v2386_v7 = vld [vmem:[#allocation7 + $0x58] sm:$0xf0] }
  0xc4   :  { %829 = vmatpush.bf16.msrb.mxu3 %v2393_v8  ;;  %v2345_v35 = vor.u32 %v3113_v21, %v2344_v30  ;;  %v3148_v8 = vld [vmem:[#allocation7 + $0x134] sm:$0xf]  ;;  %v3135_v30 = vld [vmem:[#allocation7 + $0xcc] sm:$0xf]  ;;  %v2456_v21 = vld [vmem:[#allocation7 + $0xd0] sm:$0xf] }
  0xc5   :  { %v135_v32 = vrot.slane %v134_v27, 4  ;;  %564 = vmatpush.bf16.msrb.mxu1 %v2193_v13  ;;  %v3144_v13 = vld [vmem:[#allocation7 + $0x10c] sm:$0xf0] }
  0xc7   :  { %v136_v38 = vadd.f32 %v135_v32, %v134_v27  ;;  %840 = vmatpush.bf16.msra.mxu0 %v2445_v46  ;;  %v2373_v27 = vor.u32 %v3116_v22, %v2370_v24  ;;  %v3110_v32 = vld [vmem:[#allocation7 + $0x4] sm:$0xf]  ;;  %v2473_v24 = vor.u32 %v3144_v13, %v2472_v12  ;;  %v3111_v12 = vld [vmem:[#allocation7 + $0xc] sm:$0xf] }
  0xc8   :  { %830 = vmatpush.bf16.msrb.mxu3 %v2369_v23  ;;  %v2349_v36 = vor.u32 %v3110_v32, %v2346_v33  ;;  %v3142_v22 = vld [vmem:[#allocation7 + $0x104] sm:$0xf]  ;;  %v2482_v23 = vld [vmem:[#allocation7 + $0x118] sm:$0xf0]  ;;  %v3139_v32 = vld [vmem:[#allocation7 + $0xe4] sm:$0xf0] }
  0xc9   :  { %v137_v45 = vrot.slane %v136_v38, 2  ;;  %565 = vmatpush.bf16.msrb.mxu1 %v2169_v31  ;;  %v2485_v29 = vor.u32 %v3142_v22, %v2482_v23  ;;  %v2450_v31 = vld [vmem:[#allocation7 + $0xe0] sm:$0xf0]  ;;  %v3136_v33 = vld [vmem:[#allocation7 + $0xd4] sm:$0xf] }
  0xca   :  { %v2354_v13 = vld [vmem:[#allocation7 + $0x20] sm:$0xf0]  ;;  %v2704_v22 = vld [vmem:[#allocation7 + $0x450] sm:$0xf]  ;;  %v3251_v23 = vld [vmem:[#allocation7 + $0x464] sm:$0xf0] }
  0xcb   :  { %v138_v53 = vadd.f32 %v137_v45, %v136_v38  ;;  %841 = vmatpush.bf16.msra.mxu0 %v2421_v60  ;;  %v3154_v60 = vld [vmem:[#allocation7 + $0x164] sm:$0xf] }
  0xcc   :  { %831 = vmatpush.bf16.msrb.mxu3 %v2345_v35 }
  0xcd   :  { %v139_v59 = vrot.slane %v138_v53, 1 }
  0xcf   :  { %v140_v3 = vadd.f32 %v139_v59, %v138_v53  ;;  %842 = vmatpush.bf16.msra.mxu0 %v2397_v9  ;;  %v2520_v53 = vld [vmem:[#allocation7 + $0x158] sm:$0xf]  ;;  %v2506_v9 = vld [vmem:[#allocation7 + $0x148] sm:$0xf0] }
  0xd0   :  { %v3157_v59 = vld [vmem:[#allocation7 + $0x174] sm:$0xf0]  ;;  %v2509_v15 = vor.u32 %v3148_v8, %v2506_v9  ;;  %v2352_v8 = vld [vmem:[#allocation7 + $0x8] sm:$0xf] }
  0xd1   :  { %v141_v10 = vmul.f32 0.125, %v140_v3  ;;  %v2529_v2 = vor.u32 %v3157_v59, %v2528_v57  ;;  %v2533_v3 = vor.u32 %v3154_v60, %v2530_v61  ;;  %v3127_v57 = vld [vmem:[#allocation7 + $0x84] sm:$0xf0]  ;;  %v3124_v59 = vld [vmem:[#allocation7 + $0x74] sm:$0xf] }
  0xd2   :  { %v2410_v60 = vld [vmem:[#allocation7 + $0x88] sm:$0xf0] }
  0xd3   :  { %v142_v18 = vadd.f32 1e-05, %v141_v10  ;;  %843 = vmatpush.bf16.msra.mxu0 %v2373_v27  ;;  %v2497_v10 = vor.u32 %v3150_v1, %v2496_v0  ;;  %v3138_v27 = vld [vmem:[#allocation7 + $0xdc] sm:$0xf0]  ;;  %v3120_v0 = vld [vmem:[#allocation7 + $0x4c] sm:$0xf0]  ;;  %v2409_v1 = vor.u32 %v3127_v57, %v2408_v56 }
  0xd4   :  { %v2449_v35 = vor.u32 %v3138_v27, %v2448_v26  ;;  %v2712_v26 = vld [vmem:[#allocation7 + $0x458] sm:$0xf]  ;;  %v3237_v56 = vld [vmem:[#allocation7 + $0x3fc] sm:$0xf]  ;;  %v2666_v57 = vld [vmem:[#allocation7 + $0x410] sm:$0xf0] }
  0xd5   :  { %3363 = vrsqrt.f32 %v142_v18  ;;  %vm149_vm1 = vweird.f32 %v142_v18 }
  0xd7   :  { %844 = vmatpush.bf16.msra.mxu0 %v2349_v36  ;;  %v2453_v36 = vor.u32 %v3135_v30, %v2450_v31  ;;  %v3249_v30 = vld [vmem:[#allocation7 + $0x45c] sm:$0xf]  ;;  %v2714_v31 = vld [vmem:[#allocation7 + $0x470] sm:$0xf0] }
  0xdb   :  { %v3364_v37 = vpop.eup %3363 }
  0xdc   :  { %v144_v38 = vmul.f32 %v3364_v37, %v142_v18  ;;  %vm150_vm0 = vweird.f32 %v3364_v37  ;;  %v2474_v18 = vld [vmem:[#allocation7 + $0x110] sm:$0xf0] }
  0xdd   :  { %vm151_vm2 = vmor %vm149_vm1, %vm150_vm0  ;;  %v2477_v25 = vor.u32 %v3141_v16, %v2474_v18  ;;  %v2360_v16 = vld [vmem:[#allocation7 + $0x10] sm:$0xf]  ;;  %v3115_v18 = vld [vmem:[#allocation7 + $0x24] sm:$0xf0] }
  0xde   :  { %v145_v39 = vmul.f32 %v3364_v37, %v144_v38  ;;  %v3132_v38 = vld [vmem:[#allocation7 + $0xac] sm:$0xf0] }
  0xe0   :  { %v146_v40 = vmul.f32 0.5, %v145_v39  ;;  %v2457_v39 = vor.u32 %v3139_v32, %v2456_v21  ;;  %v2361_v21 = vor.u32 %v3115_v18, %v2360_v16  ;;  %v2365_v32 = vor.u32 %v3112_v19, %v2362_v20  ;;  %v2618_v16 = vld [vmem:[#allocation7 + $0x3b0] sm:$0xf0]  ;;  %v2584_v20 = vld [vmem:[#allocation7 + $0x360] sm:$0xf] }
  0xe2   :  { %v147_v41 = vsub.f32 1.5, %v146_v40  ;;  %v2461_v40 = vor.u32 %v3136_v33, %v2458_v34  ;;  %v2705_v33 = vor.u32 %v3251_v23, %v2704_v22  ;;  %v3221_v22 = vld [vmem:[#allocation7 + $0x374] sm:$0xf0] }
  0xe4   :  { %v148_v42 = vmul.f32 %v3364_v37, %v147_v41  ;;  %v3129_v41 = vld [vmem:[#allocation7 + $0x9c] sm:$0xf] }
  0xe6   :  { %v152_v44 = vsel %vm151_vm2, %v3364_v37, %v148_v42  ;;  %v2424_v37 = vld [vmem:[#allocation7 + $0x98] sm:$0xf]  ;;  %v2426_v42 = vld [vmem:[#allocation7 + $0xb0] sm:$0xf0] }
  0xe7   :  { %v154_v45 = vmul.f32 %v153_v43, %v152_v44  ;;  %v2432_v43 = vld [vmem:[#allocation7 + $0xa0] sm:$0xf]  ;;  %v3133_v44 = vld [vmem:[#allocation7 + $0xb4] sm:$0xf0] }
  0xe9   :  { %v155_v46 = vperm.slane %v154_v45, 0  ;;  %v3130_v45 = vld [vmem:[#allocation7 + $0xa4] sm:$0xf] }
  0xeb   :  { %v156_v48 = vmul.f32 %v155_v46, %v3561_v17  ;;  %v2521_v17 = vor.u32 %v3156_v54, %v2520_v53  ;;  %v2434_v46 = vld [vmem:[#allocation7 + $0xb8] sm:$0xf0]  ;;  %v3123_v54 = vld [vmem:[#allocation7 + $0x6c] sm:$0xf] }
  0xec   :  { %v2437_v53 = vor.u32 %v3130_v45, %v2434_v46 }
  0xed   :  { %v161_v49 = vadd.f32 %v3361_v47, %v156_v48  ;;  %v2425_v47 = vor.u32 %v3132_v38, %v2424_v37  ;;  %v2429_v48 = vor.u32 %v3129_v41, %v2426_v42  ;;  %v2717_v38 = vor.u32 %v3249_v30, %v2714_v31  ;;  %v2688_v41 = vld [vmem:[#allocation7 + $0x428] sm:$0xf]  ;;  %v3246_v42 = vld [vmem:[#allocation7 + $0x43c] sm:$0xf0]  ;;  %v2594_v30 = vld [vmem:[#allocation7 + $0x380] sm:$0xf0] }
  0xee   :  { %v2585_v31 = vor.u32 %v3221_v22, %v2584_v20 }
  0xef   :  { %v162_v50 = vmax.f32 %v161_v49, 0.0  ;;  %v2400_v49 = vld [vmem:[#allocation7 + $0x68] sm:$0xf] }
  0xf1   :  { %v3572_v51 = vpack.c.bf16 %v162_v50, %v162_v50  ;;  %v3126_v50 = vld [vmem:[#allocation7 + $0x7c] sm:$0xf0] }
  0xf2   :  { %v2401_v61 = vor.u32 %v3126_v50, %v2400_v49  ;;  %v2689_v49 = vor.u32 %v3246_v42, %v2688_v41  ;;  %v2570_v41 = vld [vmem:[#allocation7 + $0x350] sm:$0xf0]  ;;  %v2536_v42 = vld [vmem:[#allocation7 + $0x300] sm:$0xf] }
  0xf3   :  { %v262_v52 = vunpack.c.l.b16 %v3572_v51 }
  0xf5   :  { %v3575_v58 = vpack.c.b16 %v262_v52, %v262_v52  ;;  %v2433_v52 = vor.u32 %v3133_v44, %v2432_v43  ;;  %v3243_v43 = vld [vmem:[#allocation7 + $0x42c] sm:$0xf]  ;;  %v2690_v44 = vld [vmem:[#allocation7 + $0x440] sm:$0xf0] }
  0xf6   :  { %v2693_v50 = vor.u32 %v3243_v43, %v2690_v44 }
  0xf7   :  { %v3578_v62 = vrot.slane %v3575_v58, 1 }
  0xf9   :  { %514 = vmatmul.bf16.vlgmr.msra.gmra.mxu1 %v3578_v62  ;;  %527 = vmatmul.bf16.vlgmr.msra.gmra.mxu2 %v3578_v62 }
  0xfa   :  { %540 = vmatmul.bf16.vlgmr.msra.gmra.mxu3 %v3578_v62  ;;  %553 = vmatmul.bf16.vlgmr.msrb.gmra.mxu0 %v3578_v62 }
  0xfb   :  { %850 = vmatpush.bf16.msra.mxu1 %v2521_v17  ;;  %863 = vmatpush.bf16.msra.mxu2 %v2525_v63  ;;  %v2405_v17 = vor.u32 %v3123_v54, %v2402_v55  ;;  %v2376_v63 = vld [vmem:[#allocation7 + $0x38] sm:$0xf]  ;;  %v3240_v55 = vld [vmem:[#allocation7 + $0x40c] sm:$0xf0] }
  0xfc   :  { %876 = vmatpush.bf16.msra.mxu3 %v2529_v2  ;;  %889 = vmatpush.bf16.msrb.mxu0 %v2533_v3  ;;  %v2413_v2 = vor.u32 %v3124_v59, %v2410_v60  ;;  %v3117_v3 = vld [vmem:[#allocation7 + $0x3c] sm:$0xf]  ;;  %v2377_v9 = vor.u32 %v3120_v0, %v2376_v63  ;;  %v2664_v54 = vld [vmem:[#allocation7 + $0x3f8] sm:$0xf]  ;;  %v2669_v0 = vor.u32 %v3237_v56, %v2666_v57  ;;  %v3250_v57 = vld [vmem:[#allocation7 + $0x464] sm:$0xf] }
  0xfd   :  { %v2665_v63 = vor.u32 %v3240_v55, %v2664_v54  ;;  %v2546_v54 = vld [vmem:[#allocation7 + $0x320] sm:$0xf0]  ;;  %v2720_v55 = vld [vmem:[#allocation7 + $0x460] sm:$0xf]  ;;  %v3253_v56 = vld [vmem:[#allocation7 + $0x474] sm:$0xf0] }
  0xff   :  { %851 = vmatpush.bf16.msra.mxu1 %v2497_v10  ;;  %864 = vmatpush.bf16.msra.mxu2 %v2501_v11  ;;  %v2381_v10 = vor.u32 %v3117_v3, %v2378_v4  ;;  %v3114_v11 = vld [vmem:[#allocation7 + $0x1c] sm:$0xf0]  ;;  %v2640_v3 = vld [vmem:[#allocation7 + $0x3c8] sm:$0xf] }
 0x100   :  { %877 = vmatpush.bf16.msra.mxu3 %v2505_v14  ;;  %890 = vmatpush.bf16.msrb.mxu0 %v2509_v15  ;;  %v2389_v15 = vor.u32 %v3118_v6, %v2386_v7  ;;  %v2353_v27 = vor.u32 %v3114_v11, %v2352_v8  ;;  %v3234_v4 = vld [vmem:[#allocation7 + $0x3dc] sm:$0xf0]  ;;  %v2608_v7 = vld [vmem:[#allocation7 + $0x390] sm:$0xf]  ;;  %v3227_v8 = vld [vmem:[#allocation7 + $0x3a4] sm:$0xf0] }
 0x101   :  { %v3224_v11 = vld [vmem:[#allocation7 + $0x394] sm:$0xf]  ;;  %v2609_v18 = vor.u32 %v3227_v8, %v2608_v7 }
 0x102   :  { %v3244_v8 = vld [vmem:[#allocation7 + $0x434] sm:$0xf] }
 0x103   :  { %852 = vmatpush.bf16.msra.mxu1 %v2473_v24  ;;  %865 = vmatpush.bf16.msra.mxu2 %v2477_v25  ;;  %v3248_v24 = vld [vmem:[#allocation7 + $0x454] sm:$0xf]  ;;  %v2706_v25 = vld [vmem:[#allocation7 + $0x468] sm:$0xf0] }
 0x104   :  { %878 = vmatpush.bf16.msra.mxu3 %v2481_v28  ;;  %891 = vmatpush.bf16.msrb.mxu0 %v2485_v29  ;;  %v2357_v28 = vor.u32 %v3111_v12, %v2354_v13  ;;  %v3252_v29 = vld [vmem:[#allocation7 + $0x46c] sm:$0xf0]  ;;  %v2709_v34 = vor.u32 %v3248_v24, %v2706_v25  ;;  %v2610_v12 = vld [vmem:[#allocation7 + $0x3a8] sm:$0xf0]  ;;  %v2616_v13 = vld [vmem:[#allocation7 + $0x398] sm:$0xf] }
 0x105   :  { %v2713_v37 = vor.u32 %v3252_v29, %v2712_v26  ;;  %v2613_v19 = vor.u32 %v3224_v11, %v2610_v12  ;;  %v3218_v25 = vld [vmem:[#allocation7 + $0x364] sm:$0xf]  ;;  %v2586_v26 = vld [vmem:[#allocation7 + $0x378] sm:$0xf0]  ;;  %v3219_v29 = vld [vmem:[#allocation7 + $0x36c] sm:$0xf] }
 0x106   :  { %v3293_v11 = vld [vmem:[#allocation7 + $0x5b4] sm:$0xf0]  ;;  %v3290_v12 = vld [vmem:[#allocation7 + $0x5a4] sm:$0xf] }
 0x107   :  { %853 = vmatpush.bf16.msra.mxu1 %v2449_v35  ;;  %866 = vmatpush.bf16.msra.mxu2 %v2453_v36  ;;  %v2680_v35 = vld [vmem:[#allocation7 + $0x420] sm:$0xf]  ;;  %v3245_v36 = vld [vmem:[#allocation7 + $0x434] sm:$0xf0] }
 0x108   :  { %879 = vmatpush.bf16.msra.mxu3 %v2457_v39  ;;  %892 = vmatpush.bf16.msrb.mxu0 %v2461_v40  ;;  %v3242_v39 = vld [vmem:[#allocation7 + $0x424] sm:$0xf]  ;;  %v2682_v40 = vld [vmem:[#allocation7 + $0x438] sm:$0xf0]  ;;  %v2681_v45 = vor.u32 %v3245_v36, %v2680_v35  ;;  %v2597_v35 = vor.u32 %v3219_v29, %v2594_v30  ;;  %v3212_v36 = vld [vmem:[#allocation7 + $0x334] sm:$0xf] }
 0x109   :  { %566 = vmatmul.bf16.vlgmr.msrb.gmra.mxu1 %v3578_v62  ;;  %579 = vmatmul.bf16.vlgmr.msrb.gmra.mxu2 %v3578_v62  ;;  %v2384_v62 = vld [vmem:[#allocation7 + $0x40] sm:$0xf]  ;;  %v2685_v46 = vor.u32 %v3242_v39, %v2682_v40  ;;  %v3216_v39 = vld [vmem:[#allocation7 + $0x34c] sm:$0xf0]  ;;  %v3213_v40 = vld [vmem:[#allocation7 + $0x33c] sm:$0xf] }
 0x10a   :  { %832 = vmatmul.bf16.vlgmr.msrb.gmra.mxu3 %v3572_v51  ;;  %845 = vmatmul.bf16.vlgmr.msra.gmra.mxu0 %v3572_v51  ;;  %v2385_v14 = vor.u32 %v3121_v5, %v2384_v62  ;;  %v3231_v62 = vld [vmem:[#allocation7 + $0x3cc] sm:$0xf]  ;;  %v2642_v5 = vld [vmem:[#allocation7 + $0x3e0] sm:$0xf0] }
 0x10b   :  { %854 = vmatpush.bf16.msra.mxu1 %v2425_v47  ;;  %867 = vmatpush.bf16.msra.mxu2 %v2429_v48  ;;  %v2656_v47 = vld [vmem:[#allocation7 + $0x3f0] sm:$0xf]  ;;  %v3239_v48 = vld [vmem:[#allocation7 + $0x404] sm:$0xf0] }
 0x10c   :  { %880 = vmatpush.bf16.msra.mxu3 %v2433_v52  ;;  %893 = vmatpush.bf16.msrb.mxu0 %v2437_v53  ;;  %v3236_v52 = vld [vmem:[#allocation7 + $0x3f4] sm:$0xf]  ;;  %v2658_v53 = vld [vmem:[#allocation7 + $0x408] sm:$0xf0]  ;;  %v2657_v59 = vor.u32 %v3239_v48, %v2656_v47  ;;  %v2538_v47 = vld [vmem:[#allocation7 + $0x318] sm:$0xf0] }
 0x10d   :  { %v2661_v60 = vor.u32 %v3236_v52, %v2658_v53  ;;  %v3210_v52 = vld [vmem:[#allocation7 + $0x31c] sm:$0xf0]  ;;  %v3207_v53 = vld [vmem:[#allocation7 + $0x30c] sm:$0xf] }
 0x10f   :  { %855 = vmatpush.bf16.msra.mxu1 %v2401_v61  ;;  %868 = vmatpush.bf16.msra.mxu2 %v2405_v17  ;;  %v2632_v61 = vld [vmem:[#allocation7 + $0x3c0] sm:$0xf]  ;;  %v3233_v17 = vld [vmem:[#allocation7 + $0x3d4] sm:$0xf0] }
 0x110   :  { %881 = vmatpush.bf16.msra.mxu3 %v2409_v1  ;;  %894 = vmatpush.bf16.msrb.mxu0 %v2413_v2  ;;  %v3230_v1 = vld [vmem:[#allocation7 + $0x3c4] sm:$0xf]  ;;  %v2634_v2 = vld [vmem:[#allocation7 + $0x3d8] sm:$0xf0]  ;;  %v2633_v6 = vor.u32 %v3233_v17, %v2632_v61 }
 0x113   :  { %856 = vmatpush.bf16.msra.mxu1 %v2377_v9  ;;  %869 = vmatpush.bf16.msra.mxu2 %v2381_v10  ;;  %v2641_v9 = vor.u32 %v3234_v4, %v2640_v3  ;;  %v2645_v10 = vor.u32 %v3231_v62, %v2642_v5  ;;  %v2549_v3 = vor.u32 %v3207_v53, %v2546_v54  ;;  %v2696_v5 = vld [vmem:[#allocation7 + $0x430] sm:$0xf] }
 0x114   :  { %882 = vmatpush.bf16.msra.mxu3 %v2385_v14  ;;  %895 = vmatpush.bf16.msrb.mxu0 %v2389_v15  ;;  %v3228_v14 = vld [vmem:[#allocation7 + $0x3ac] sm:$0xf0]  ;;  %v3225_v15 = vld [vmem:[#allocation7 + $0x39c] sm:$0xf]  ;;  %v2721_v4 = vor.u32 %v3253_v56, %v2720_v55  ;;  %v3223_v56 = vld [vmem:[#allocation7 + $0x384] sm:$0xf0] }
 0x115   :  { %v2617_v23 = vor.u32 %v3228_v14, %v2616_v13  ;;  %v2621_v24 = vor.u32 %v3225_v15, %v2618_v16  ;;  %v2874_v13 = vld [vmem:[#allocation7 + $0x5b8] sm:$0xf0]  ;;  %v3593_v14 = vrot.slane %v3575_v58, 2  ;;  %v2600_v55 = vld [vmem:[#allocation7 + $0x370] sm:$0xf] }
 0x116   :  { %v2877_v22 = vor.u32 %v3290_v12, %v2874_v13  ;;  %v2552_v12 = vld [vmem:[#allocation7 + $0x310] sm:$0xf] }
 0x117   :  { %857 = vmatpush.bf16.msra.mxu1 %v2353_v27  ;;  %870 = vmatpush.bf16.msra.mxu2 %v2357_v28  ;;  %v2592_v27 = vld [vmem:[#allocation7 + $0x368] sm:$0xf]  ;;  %v3222_v28 = vld [vmem:[#allocation7 + $0x37c] sm:$0xf0] }
 0x118   :  { %883 = vmatpush.bf16.msra.mxu3 %v2361_v21  ;;  %896 = vmatpush.bf16.msrb.mxu0 %v2365_v32  ;;  %v2589_v21 = vor.u32 %v3218_v25, %v2586_v26  ;;  %v2560_v32 = vld [vmem:[#allocation7 + $0x330] sm:$0xf]  ;;  %v3287_v26 = vld [vmem:[#allocation7 + $0x584] sm:$0xf0] }
 0x119   :  { %v2848_v25 = vld [vmem:[#allocation7 + $0x570] sm:$0xf] }
 0x11a   :  { %858 = vmatmul.bf16.vlgmr.msra.gmra.mxu1 %v3572_v51  ;;  %871 = vmatmul.bf16.vlgmr.msra.gmra.mxu2 %v3572_v51 }
 0x11b   :  { %1193 = vmatpush.bf16.msrb.mxu1 %v2705_v33  ;;  %1206 = vmatpush.bf16.msrb.mxu2 %v2709_v34  ;;  %v3215_v33 = vld [vmem:[#allocation7 + $0x344] sm:$0xf0]  ;;  %v2593_v34 = vor.u32 %v3222_v28, %v2592_v27  ;;  %v3284_v27 = vld [vmem:[#allocation7 + $0x574] sm:$0xf]  ;;  %v2850_v28 = vld [vmem:[#allocation7 + $0x588] sm:$0xf0] }
 0x11c   :  { %1219 = vmatpush.bf16.msrb.mxu3 %v2713_v37  ;;  %1232 = vmatpush.bf16.msra.mxu0 %v2717_v38  ;;  %v2562_v37 = vld [vmem:[#allocation7 + $0x348] sm:$0xf0]  ;;  %v2568_v38 = vld [vmem:[#allocation7 + $0x338] sm:$0xf]  ;;  %v2561_v43 = vor.u32 %v3215_v33, %v2560_v32  ;;  %v2849_v32 = vor.u32 %v3287_v26, %v2848_v25  ;;  %v2853_v33 = vor.u32 %v3284_v27, %v2850_v28  ;;  %v3254_v25 = vld [vmem:[#allocation7 + $0x484] sm:$0xf] }
 0x11d   :  { %884 = vmatmul.bf16.vlgmr.msra.gmra.mxu3 %v3572_v51  ;;  %897 = vmatmul.bf16.vlgmr.msrb.gmra.mxu0 %v3572_v51  ;;  %v2637_v51 = vor.u32 %v3230_v1, %v2634_v2  ;;  %v2565_v44 = vor.u32 %v3212_v36, %v2562_v37  ;;  %v2569_v48 = vor.u32 %v3216_v39, %v2568_v38  ;;  %v2898_v1 = vld [vmem:[#allocation7 + $0x5e8] sm:$0xf0]  ;;  %v2824_v36 = vld [vmem:[#allocation7 + $0x540] sm:$0xf]  ;;  %v3281_v37 = vld [vmem:[#allocation7 + $0x554] sm:$0xf0] }
 0x11e   :  { %v3278_v38 = vld [vmem:[#allocation7 + $0x544] sm:$0xf]  ;;  %v2826_v39 = vld [vmem:[#allocation7 + $0x558] sm:$0xf0]  ;;  %v2904_v27 = vld [vmem:[#allocation7 + $0x5d8] sm:$0xf] }
 0x11f   :  { %1194 = vmatpush.bf16.msrb.mxu1 %v2681_v45  ;;  %1207 = vmatpush.bf16.msrb.mxu2 %v2685_v46  ;;  %v3209_v45 = vld [vmem:[#allocation7 + $0x314] sm:$0xf0]  ;;  %v3206_v46 = vld [vmem:[#allocation7 + $0x304] sm:$0xf]  ;;  %v2730_v26 = vld [vmem:[#allocation7 + $0x498] sm:$0xf0] }
 0x120   :  { %1220 = vmatpush.bf16.msrb.mxu3 %v2689_v49  ;;  %1233 = vmatpush.bf16.msra.mxu0 %v2693_v50  ;;  %v2573_v49 = vor.u32 %v3213_v40, %v2570_v41  ;;  %v2544_v50 = vld [vmem:[#allocation7 + $0x308] sm:$0xf]  ;;  %v2537_v61 = vor.u32 %v3209_v45, %v2536_v42  ;;  %v2541_v17 = vor.u32 %v3206_v46, %v2538_v47  ;;  %v2624_v42 = vld [vmem:[#allocation7 + $0x3a0] sm:$0xf]  ;;  %v3226_v46 = vld [vmem:[#allocation7 + $0x3a4] sm:$0xf] }
 0x121   :  { %v2545_v2 = vor.u32 %v3210_v52, %v2544_v50  ;;  %v2829_v45 = vor.u32 %v3278_v38, %v2826_v39  ;;  %v2626_v47 = vld [vmem:[#allocation7 + $0x3b8] sm:$0xf0]  ;;  %v3272_v50 = vld [vmem:[#allocation7 + $0x514] sm:$0xf]  ;;  %v2802_v52 = vld [vmem:[#allocation7 + $0x528] sm:$0xf0] }
 0x122   :  { %v2629_v54 = vor.u32 %v3226_v46, %v2626_v47  ;;  %v3300_v28 = vld [vmem:[#allocation7 + $0x5ec] sm:$0xf0]  ;;  %v3295_v47 = vld [vmem:[#allocation7 + $0x5c4] sm:$0xf0] }
 0x123   :  { %1195 = vmatpush.bf16.msrb.mxu1 %v2657_v59  ;;  %1208 = vmatpush.bf16.msrb.mxu2 %v2661_v60  ;;  %v2722_v59 = vld [vmem:[#allocation7 + $0x478] sm:$0xf0]  ;;  %v2896_v60 = vld [vmem:[#allocation7 + $0x5d0] sm:$0xf]  ;;  %v2905_v38 = vor.u32 %v3300_v28, %v2904_v27  ;;  %v3270_v27 = vld [vmem:[#allocation7 + $0x4fc] sm:$0xf0] }
 0x124   :  { %1221 = vmatpush.bf16.msrb.mxu3 %v2665_v63  ;;  %1234 = vmatpush.bf16.msra.mxu0 %v2669_v0  ;;  %v3299_v63 = vld [vmem:[#allocation7 + $0x5e4] sm:$0xf0]  ;;  %v3296_v0 = vld [vmem:[#allocation7 + $0x5d4] sm:$0xf]  ;;  %v2725_v62 = vor.u32 %v3250_v57, %v2722_v59  ;;  %v2805_v59 = vor.u32 %v3272_v50, %v2802_v52  ;;  %v2888_v46 = vld [vmem:[#allocation7 + $0x5b0] sm:$0xf] }
 0x125   :  { %v2901_v7 = vor.u32 %v3296_v0, %v2898_v1  ;;  %v3266_v0 = vld [vmem:[#allocation7 + $0x4e4] sm:$0xf]  ;;  %v2778_v1 = vld [vmem:[#allocation7 + $0x4f8] sm:$0xf0]  ;;  %v3600_v50 = vrot.slane %v3575_v58, 3 }
 0x127   :  { %1196 = vmatpush.bf16.msrb.mxu1 %v2633_v6  ;;  %1209 = vmatpush.bf16.msrb.mxu2 %v2637_v51  ;;  %v3247_v6 = vld [vmem:[#allocation7 + $0x444] sm:$0xf0]  ;;  %v2897_v51 = vor.u32 %v3299_v63, %v2896_v60  ;;  %v3220_v60 = vld [vmem:[#allocation7 + $0x374] sm:$0xf]  ;;  %v3269_v63 = vld [vmem:[#allocation7 + $0x4f4] sm:$0xf0] }
 0x128   :  { %1222 = vmatpush.bf16.msrb.mxu3 %v2641_v9  ;;  %1235 = vmatpush.bf16.msra.mxu0 %v2645_v10  ;;  %v2698_v9 = vld [vmem:[#allocation7 + $0x448] sm:$0xf0]  ;;  %v2872_v10 = vld [vmem:[#allocation7 + $0x5a0] sm:$0xf]  ;;  %v2697_v15 = vor.u32 %v3247_v6, %v2696_v5  ;;  %v2781_v6 = vor.u32 %v3266_v0, %v2778_v1  ;;  %v2866_v0 = vld [vmem:[#allocation7 + $0x598] sm:$0xf0] }
 0x129   :  { %v2701_v16 = vor.u32 %v3244_v8, %v2698_v9  ;;  %v2873_v20 = vor.u32 %v3293_v11, %v2872_v10  ;;  %v2752_v8 = vld [vmem:[#allocation7 + $0x4b0] sm:$0xf]  ;;  %v3263_v9 = vld [vmem:[#allocation7 + $0x4c4] sm:$0xf0]  ;;  %v3260_v10 = vld [vmem:[#allocation7 + $0x4b4] sm:$0xf] }
 0x12a   :  { %v2754_v11 = vld [vmem:[#allocation7 + $0x4c8] sm:$0xf0] }
 0x12b   :  { %1197 = vmatpush.bf16.msrb.mxu1 %v2609_v18  ;;  %1210 = vmatpush.bf16.msrb.mxu2 %v2613_v19  ;;  %v2672_v18 = vld [vmem:[#allocation7 + $0x400] sm:$0xf]  ;;  %v3241_v19 = vld [vmem:[#allocation7 + $0x414] sm:$0xf0] }
 0x12c   :  { %1223 = vmatpush.bf16.msrb.mxu3 %v2617_v23  ;;  %1236 = vmatpush.bf16.msra.mxu0 %v2621_v24  ;;  %v3238_v23 = vld [vmem:[#allocation7 + $0x404] sm:$0xf]  ;;  %v2674_v24 = vld [vmem:[#allocation7 + $0x418] sm:$0xf0]  ;;  %v2673_v29 = vor.u32 %v3241_v19, %v2672_v18  ;;  %v3208_v18 = vld [vmem:[#allocation7 + $0x314] sm:$0xf] }
 0x12d   :  { %v2677_v30 = vor.u32 %v3238_v23, %v2674_v24  ;;  %v2554_v19 = vld [vmem:[#allocation7 + $0x328] sm:$0xf0]  ;;  %v2728_v23 = vld [vmem:[#allocation7 + $0x480] sm:$0xf]  ;;  %v3257_v24 = vld [vmem:[#allocation7 + $0x494] sm:$0xf0] }
 0x12f   :  { %1198 = vmatpush.bf16.msrb.mxu1 %v2585_v31  ;;  %1211 = vmatpush.bf16.msrb.mxu2 %v2589_v21  ;;  %v2648_v31 = vld [vmem:[#allocation7 + $0x3d0] sm:$0xf]  ;;  %v3235_v21 = vld [vmem:[#allocation7 + $0x3e4] sm:$0xf0] }
 0x130   :  { %1224 = vmatpush.bf16.msrb.mxu3 %v2593_v34  ;;  %1237 = vmatpush.bf16.msra.mxu0 %v2597_v35  ;;  %v3232_v34 = vld [vmem:[#allocation7 + $0x3d4] sm:$0xf]  ;;  %v2650_v35 = vld [vmem:[#allocation7 + $0x3e8] sm:$0xf0]  ;;  %v2649_v40 = vor.u32 %v3235_v21, %v2648_v31  ;;  %v2912_v31 = vld [vmem:[#allocation7 + $0x5e0] sm:$0xf] }
 0x131   :  { %v2653_v41 = vor.u32 %v3232_v34, %v2650_v35  ;;  %v3298_v34 = vld [vmem:[#allocation7 + $0x5e4] sm:$0xf]  ;;  %v2914_v35 = vld [vmem:[#allocation7 + $0x5f8] sm:$0xf0] }
 0x133   :  { %1199 = vmatpush.bf16.msrb.mxu1 %v2561_v43  ;;  %1212 = vmatpush.bf16.msrb.mxu2 %v2565_v44  ;;  %v3229_v43 = vld [vmem:[#allocation7 + $0x3b4] sm:$0xf0]  ;;  %v2825_v44 = vor.u32 %v3281_v37, %v2824_v36  ;;  %v2729_v36 = vor.u32 %v3257_v24, %v2728_v23  ;;  %v2733_v37 = vor.u32 %v3254_v25, %v2730_v26  ;;  %v2818_v23 = vld [vmem:[#allocation7 + $0x538] sm:$0xf0]  ;;  %v2784_v26 = vld [vmem:[#allocation7 + $0x4e8] sm:$0xf] }
 0x134   :  { %1225 = vmatpush.bf16.msrb.mxu3 %v2569_v48  ;;  %1238 = vmatpush.bf16.msra.mxu0 %v2573_v49  ;;  %v2800_v48 = vld [vmem:[#allocation7 + $0x510] sm:$0xf]  ;;  %v3275_v49 = vld [vmem:[#allocation7 + $0x524] sm:$0xf0]  ;;  %v2625_v53 = vor.u32 %v3229_v43, %v2624_v42  ;;  %v2917_v43 = vor.u32 %v3298_v34, %v2914_v35  ;;  %v2794_v34 = vld [vmem:[#allocation7 + $0x508] sm:$0xf0]  ;;  %v2785_v35 = vor.u32 %v3270_v27, %v2784_v26 }
 0x135   :  { %v2801_v57 = vor.u32 %v3275_v49, %v2800_v48  ;;  %v3292_v48 = vld [vmem:[#allocation7 + $0x5b4] sm:$0xf]  ;;  %v2890_v49 = vld [vmem:[#allocation7 + $0x5c8] sm:$0xf0]  ;;  %v3309_v27 = vld [vmem:[#allocation8 + $0x38] sm:$0xff] }
 0x136   :  { %v3316_v26 = vld [vmem:[#allocation8 + $0x70] sm:$0xff] }
 0x137   :  { %1200 = vmatpush.bf16.msrb.mxu1 %v2537_v61  ;;  %1213 = vmatpush.bf16.msrb.mxu2 %v2541_v17  ;;  %v2602_v61 = vld [vmem:[#allocation7 + $0x388] sm:$0xf0]  ;;  %v2776_v17 = vld [vmem:[#allocation7 + $0x4e0] sm:$0xf] }
 0x138   :  { %1226 = vmatpush.bf16.msrb.mxu3 %v2545_v2  ;;  %1239 = vmatpush.bf16.msra.mxu0 %v2549_v3  ;;  %v2601_v2 = vor.u32 %v3223_v56, %v2600_v55  ;;  %v2605_v3 = vor.u32 %v3220_v60, %v2602_v61  ;;  %v2777_v5 = vor.u32 %v3269_v63, %v2776_v17  ;;  %v3288_v55 = vld [vmem:[#allocation7 + $0x58c] sm:$0xf0]  ;;  %v2858_v60 = vld [vmem:[#allocation7 + $0x590] sm:$0xf0]  ;;  %v2864_v61 = vld [vmem:[#allocation7 + $0x580] sm:$0xf] }
 0x139   :  { %v2889_v56 = vor.u32 %v3295_v47, %v2888_v46  ;;  %v3289_v17 = vld [vmem:[#allocation7 + $0x594] sm:$0xf0]  ;;  %v3286_v63 = vld [vmem:[#allocation7 + $0x584] sm:$0xf]  ;;  %v2770_v46 = vld [vmem:[#allocation7 + $0x4d8] sm:$0xf0] }
 0x13a   :  { %1201 = vmatmul.bf16.vlgmr.msrb.gmra.mxu1 %v3593_v14  ;;  %1214 = vmatmul.bf16.vlgmr.msrb.gmra.mxu2 %v3593_v14 }
 0x13b   :  { %1245 = vmatpush.bf16.msra.mxu1 %v2721_v4  ;;  %1258 = vmatpush.bf16.msra.mxu2 %v2725_v62  ;;  %v2576_v4 = vld [vmem:[#allocation7 + $0x340] sm:$0xf]  ;;  %v3217_v62 = vld [vmem:[#allocation7 + $0x354] sm:$0xf0] }
 0x13c   :  { %1568 = vmatpush.bf16.msra.mxu3 %v2897_v51  ;;  %1581 = vmatpush.bf16.msrb.mxu0 %v2901_v7  ;;  %v3214_v51 = vld [vmem:[#allocation7 + $0x344] sm:$0xf]  ;;  %v2578_v7 = vld [vmem:[#allocation7 + $0x358] sm:$0xf0]  ;;  %v2577_v13 = vor.u32 %v3217_v62, %v2576_v4  ;;  %v2865_v4 = vor.u32 %v3289_v17, %v2864_v61  ;;  %v2869_v62 = vor.u32 %v3286_v63, %v2866_v0  ;;  %v2746_v61 = vld [vmem:[#allocation7 + $0x4a8] sm:$0xf0] }
 0x13d   :  { %1227 = vmatmul.bf16.vlgmr.msrb.gmra.mxu3 %v3593_v14  ;;  %1240 = vmatmul.bf16.vlgmr.msra.gmra.mxu0 %v3593_v14 }
 0x13f   :  { %1246 = vmatpush.bf16.msra.mxu1 %v2697_v15  ;;  %1259 = vmatpush.bf16.msra.mxu2 %v2701_v16  ;;  %v2581_v15 = vor.u32 %v3214_v51, %v2578_v7  ;;  %v3211_v16 = vld [vmem:[#allocation7 + $0x324] sm:$0xf0]  ;;  %v3280_v7 = vld [vmem:[#allocation7 + $0x554] sm:$0xf] }
 0x140   :  { %1569 = vmatpush.bf16.msra.mxu3 %v2873_v20  ;;  %1582 = vmatpush.bf16.msrb.mxu0 %v2877_v22  ;;  %v2753_v20 = vor.u32 %v3263_v9, %v2752_v8  ;;  %v2757_v22 = vor.u32 %v3260_v10, %v2754_v11  ;;  %v2553_v21 = vor.u32 %v3211_v16, %v2552_v12  ;;  %v3283_v51 = vld [vmem:[#allocation7 + $0x564] sm:$0xf0]  ;;  %v2842_v8 = vld [vmem:[#allocation7 + $0x568] sm:$0xf0]  ;;  %v2808_v11 = vld [vmem:[#allocation7 + $0x518] sm:$0xf] }
 0x141   :  { %v3276_v12 = vld [vmem:[#allocation7 + $0x52c] sm:$0xf0]  ;;  %v3273_v16 = vld [vmem:[#allocation7 + $0x51c] sm:$0xf] }
 0x142   :  { %v2809_v24 = vor.u32 %v3276_v12, %v2808_v11 }
 0x143   :  { %1247 = vmatpush.bf16.msra.mxu1 %v2673_v29  ;;  %1260 = vmatpush.bf16.msra.mxu2 %v2677_v30  ;;  %v3297_v29 = vld [vmem:[#allocation7 + $0x5dc] sm:$0xf]  ;;  %v2906_v30 = vld [vmem:[#allocation7 + $0x5f0] sm:$0xf0] }
 0x144   :  { %1570 = vmatpush.bf16.msra.mxu3 %v2849_v32  ;;  %1583 = vmatpush.bf16.msrb.mxu0 %v2853_v33  ;;  %v2557_v32 = vor.u32 %v3208_v18, %v2554_v19  ;;  %v3301_v33 = vld [vmem:[#allocation7 + $0x5f4] sm:$0xf0]  ;;  %v2909_v39 = vor.u32 %v3297_v29, %v2906_v30  ;;  %v2810_v18 = vld [vmem:[#allocation7 + $0x530] sm:$0xf0]  ;;  %v2816_v19 = vld [vmem:[#allocation7 + $0x520] sm:$0xf] }
 0x145   :  { %v2913_v42 = vor.u32 %v3301_v33, %v2912_v31  ;;  %v2813_v25 = vor.u32 %v3273_v16, %v2810_v18  ;;  %v3267_v30 = vld [vmem:[#allocation7 + $0x4ec] sm:$0xf]  ;;  %v2786_v31 = vld [vmem:[#allocation7 + $0x500] sm:$0xf0]  ;;  %v3268_v33 = vld [vmem:[#allocation7 + $0x4f4] sm:$0xf] }
 0x146   :  { %v3317_v18 = vld [vmem:[#allocation8 + $0x78] sm:$0xff] }
 0x147   :  { %1248 = vmatpush.bf16.msra.mxu1 %v2649_v40  ;;  %1261 = vmatpush.bf16.msra.mxu2 %v2653_v41  ;;  %v2880_v40 = vld [vmem:[#allocation7 + $0x5a8] sm:$0xf]  ;;  %v3294_v41 = vld [vmem:[#allocation7 + $0x5bc] sm:$0xf0] }
 0x148   :  { %1571 = vmatpush.bf16.msra.mxu3 %v2825_v44  ;;  %1584 = vmatpush.bf16.msrb.mxu0 %v2829_v45  ;;  %v3291_v44 = vld [vmem:[#allocation7 + $0x5ac] sm:$0xf]  ;;  %v2882_v45 = vld [vmem:[#allocation7 + $0x5c0] sm:$0xf0]  ;;  %v2881_v52 = vor.u32 %v3294_v41, %v2880_v40  ;;  %v2797_v40 = vor.u32 %v3268_v33, %v2794_v34  ;;  %v3261_v41 = vld [vmem:[#allocation7 + $0x4bc] sm:$0xf] }
 0x14b   :  { %1249 = vmatpush.bf16.msra.mxu1 %v2625_v53  ;;  %1262 = vmatpush.bf16.msra.mxu2 %v2629_v54  ;;  %v2885_v53 = vor.u32 %v3291_v44, %v2882_v45  ;;  %v2856_v54 = vld [vmem:[#allocation7 + $0x578] sm:$0xf]  ;;  %v3262_v45 = vld [vmem:[#allocation7 + $0x4c4] sm:$0xf] }
 0x14c   :  { %1572 = vmatpush.bf16.msra.mxu3 %v2801_v57  ;;  %1585 = vmatpush.bf16.msrb.mxu0 %v2805_v59  ;;  %v2893_v57 = vor.u32 %v3292_v48, %v2890_v49  ;;  %v3285_v59 = vld [vmem:[#allocation7 + $0x57c] sm:$0xf]  ;;  %v2857_v58 = vor.u32 %v3288_v55, %v2856_v54  ;;  %v3265_v44 = vld [vmem:[#allocation7 + $0x4d4] sm:$0xf0]  ;;  %v2736_v49 = vld [vmem:[#allocation7 + $0x488] sm:$0xf]  ;;  %v2773_v54 = vor.u32 %v3262_v45, %v2770_v46 }
 0x14d   :  { %v2861_v1 = vor.u32 %v3285_v59, %v2858_v60  ;;  %v3255_v55 = vld [vmem:[#allocation7 + $0x48c] sm:$0xf]  ;;  %v3259_v59 = vld [vmem:[#allocation7 + $0x4a4] sm:$0xf0]  ;;  %v3256_v60 = vld [vmem:[#allocation7 + $0x494] sm:$0xf] }
 0x14e   :  { %v3325_v45 = vld [vmem:[#allocation8 + $0xb8] sm:$0xff] }
 0x14f   :  { %1250 = vmatpush.bf16.msra.mxu1 %v2601_v2  ;;  %1263 = vmatpush.bf16.msra.mxu2 %v2605_v3  ;;  %v2832_v2 = vld [vmem:[#allocation7 + $0x548] sm:$0xf]  ;;  %v3282_v3 = vld [vmem:[#allocation7 + $0x55c] sm:$0xf0]  ;;  %v3349_v46 = vld [vmem:[#allocation8 + $0x178] sm:$0xff] }
 0x150   :  { %1573 = vmatpush.bf16.msra.mxu3 %v2777_v5  ;;  %1586 = vmatpush.bf16.msrb.mxu0 %v2781_v6  ;;  %v3279_v5 = vld [vmem:[#allocation7 + $0x54c] sm:$0xf]  ;;  %v2834_v6 = vld [vmem:[#allocation7 + $0x560] sm:$0xf0]  ;;  %v2833_v9 = vor.u32 %v3282_v3, %v2832_v2 }
 0x151   :  { %v2837_v10 = vor.u32 %v3279_v5, %v2834_v6 }
 0x153   :  { %1251 = vmatpush.bf16.msra.mxu1 %v2577_v13  ;;  %1264 = vmatpush.bf16.msra.mxu2 %v2581_v15  ;;  %v2845_v15 = vor.u32 %v3280_v7, %v2842_v8 }
 0x154   :  { %1574 = vmatpush.bf16.msra.mxu3 %v2753_v20  ;;  %1587 = vmatpush.bf16.msrb.mxu0 %v2757_v22  ;;  %v3277_v20 = vld [vmem:[#allocation7 + $0x534] sm:$0xf0]  ;;  %v3274_v22 = vld [vmem:[#allocation7 + $0x524] sm:$0xf] }
 0x155   :  { %v2817_v28 = vor.u32 %v3277_v20, %v2816_v19  ;;  %v2821_v29 = vor.u32 %v3274_v22, %v2818_v23 }
 0x157   :  { %1252 = vmatpush.bf16.msra.mxu1 %v2553_v21  ;;  %1265 = vmatpush.bf16.msra.mxu2 %v2557_v32  ;;  %v2792_v21 = vld [vmem:[#allocation7 + $0x4f0] sm:$0xf]  ;;  %v3271_v32 = vld [vmem:[#allocation7 + $0x504] sm:$0xf0] }
 0x158   :  { %1575 = vmatpush.bf16.msra.mxu3 %v2729_v36  ;;  %1588 = vmatpush.bf16.msrb.mxu0 %v2733_v37  ;;  %v2789_v36 = vor.u32 %v3267_v30, %v2786_v31  ;;  %v2760_v37 = vld [vmem:[#allocation7 + $0x4b8] sm:$0xf]  ;;  %v3315_v31 = vld [vmem:[#allocation8 + $0x68] sm:$0xff] }
 0x15a   :  { %1253 = vmatmul.bf16.vlgmr.msra.gmra.mxu1 %v3593_v14  ;;  %1266 = vmatmul.bf16.vlgmr.msra.gmra.mxu2 %v3593_v14  ;;  %v2840_v14 = vld [vmem:[#allocation7 + $0x550] sm:$0xf] }
 0x15b   :  { %1594 = vmatpush.bf16.msrb.mxu1 %v2905_v38  ;;  %1607 = vmatpush.bf16.msrb.mxu2 %v2909_v39  ;;  %v2841_v13 = vor.u32 %v3283_v51, %v2840_v14  ;;  %v3264_v38 = vld [vmem:[#allocation7 + $0x4cc] sm:$0xf0]  ;;  %v2793_v39 = vor.u32 %v3271_v32, %v2792_v21  ;;  %v3314_v32 = vld [vmem:[#allocation8 + $0x60] sm:$0xff] }
 0x15c   :  { %1620 = vmatpush.bf16.msrb.mxu3 %v2913_v42  ;;  %1633 = vmatpush.bf16.msra.mxu0 %v2917_v43  ;;  %v2762_v42 = vld [vmem:[#allocation7 + $0x4d0] sm:$0xf0]  ;;  %v2768_v43 = vld [vmem:[#allocation7 + $0x4c0] sm:$0xf]  ;;  %v2761_v47 = vor.u32 %v3264_v38, %v2760_v37 }
 0x15d   :  { %1576 = vmatmul.bf16.vlgmr.msra.gmra.mxu3 %v3600_v50  ;;  %1589 = vmatmul.bf16.vlgmr.msrb.gmra.mxu0 %v3600_v50  ;;  %v2765_v48 = vor.u32 %v3261_v41, %v2762_v42  ;;  %v3308_v21 = vld [vmem:[#allocation8 + $0x30] sm:$0xff]  ;;  %v3306_v37 = vld [vmem:[#allocation8 + $0x20] sm:$0xff] }
 0x15e   :  { %v3312_v38 = vld [vmem:[#allocation8 + $0x50] sm:$0xff] }
 0x15f   :  { %1595 = vmatpush.bf16.msrb.mxu1 %v2881_v52  ;;  %1608 = vmatpush.bf16.msrb.mxu2 %v2885_v53  ;;  %v3258_v52 = vld [vmem:[#allocation7 + $0x49c] sm:$0xf0]  ;;  %v2769_v53 = vor.u32 %v3265_v44, %v2768_v43  ;;  %v3304_v41 = vld [vmem:[#allocation8 + $0x10] sm:$0xff] }
 0x160   :  { %1621 = vmatpush.bf16.msrb.mxu3 %v2889_v56  ;;  %1634 = vmatpush.bf16.msra.mxu0 %v2893_v57  ;;  %v2738_v56 = vld [vmem:[#allocation7 + $0x4a0] sm:$0xf0]  ;;  %v2744_v57 = vld [vmem:[#allocation7 + $0x490] sm:$0xf]  ;;  %v2737_v17 = vor.u32 %v3258_v52, %v2736_v49 }
 0x161   :  { %v2741_v63 = vor.u32 %v3255_v55, %v2738_v56  ;;  %v2745_v0 = vor.u32 %v3259_v59, %v2744_v57  ;;  %v3310_v44 = vld [vmem:[#allocation8 + $0x40] sm:$0xff]  ;;  %v3324_v49 = vld [vmem:[#allocation8 + $0xb0] sm:$0xff]  ;;  %v3333_v56 = vld [vmem:[#allocation8 + $0xf8] sm:$0xff] }
 0x162   :  { %v3348_v52 = vld [vmem:[#allocation8 + $0x170] sm:$0xff]  ;;  %v3341_v57 = vld [vmem:[#allocation8 + $0x138] sm:$0xff] }
 0x163   :  { %1596 = vmatpush.bf16.msrb.mxu1 %v2857_v58  ;;  %1609 = vmatpush.bf16.msrb.mxu2 %v2861_v1  ;;  %v2749_v58 = vor.u32 %v3256_v60, %v2746_v61  ;;  %v3323_v60 = vld [vmem:[#allocation8 + $0xa8] sm:$0xff] }
 0x164   :  { %1622 = vmatpush.bf16.msrb.mxu3 %v2865_v4  ;;  %1635 = vmatpush.bf16.msra.mxu0 %v2869_v62  ;;  %v3347_v61 = vld [vmem:[#allocation8 + $0x168] sm:$0xff] }
 0x167   :  { %1597 = vmatpush.bf16.msrb.mxu1 %v2833_v9  ;;  %1610 = vmatpush.bf16.msrb.mxu2 %v2837_v10 }
 0x168   :  { %1623 = vmatpush.bf16.msrb.mxu3 %v2841_v13  ;;  %1636 = vmatpush.bf16.msra.mxu0 %v2845_v15 }
 0x16b   :  { %1598 = vmatpush.bf16.msrb.mxu1 %v2809_v24  ;;  %1611 = vmatpush.bf16.msrb.mxu2 %v2813_v25 }
 0x16c   :  { %1624 = vmatpush.bf16.msrb.mxu3 %v2817_v28  ;;  %1637 = vmatpush.bf16.msra.mxu0 %v2821_v29 }
 0x16f   :  { %1599 = vmatpush.bf16.msrb.mxu1 %v2785_v35  ;;  %1612 = vmatpush.bf16.msrb.mxu2 %v2789_v36  ;;  %v3307_v35 = vld [vmem:[#allocation8 + $0x28] sm:$0xff]  ;;  %v3313_v36 = vld [vmem:[#allocation8 + $0x58] sm:$0xff] }
 0x170   :  { %1625 = vmatpush.bf16.msrb.mxu3 %v2793_v39  ;;  %1638 = vmatpush.bf16.msra.mxu0 %v2797_v40  ;;  %v3305_v39 = vld [vmem:[#allocation8 + $0x18] sm:$0xff]  ;;  %v3311_v40 = vld [vmem:[#allocation8 + $0x48] sm:$0xff] }
 0x173   :  { %1600 = vmatpush.bf16.msrb.mxu1 %v2761_v47  ;;  %1613 = vmatpush.bf16.msrb.mxu2 %v2765_v48  ;;  %v3303_v47 = vld [vmem:[#allocation8 + $0x8] sm:$0xff] }
 0x174   :  { %1626 = vmatpush.bf16.msrb.mxu3 %v2769_v53  ;;  %1639 = vmatpush.bf16.msra.mxu0 %v2773_v54  ;;  %v3302_v54 = vld [vmem:[#allocation8] sm:$0xff] }
 0x176   :  { %v515_v1 = vpop.f32.mrf.mxu1 }
 0x177   :  { %1601 = vmatpush.bf16.msrb.mxu1 %v2737_v17  ;;  %1614 = vmatpush.bf16.msrb.mxu2 %v2741_v63  ;;  %v554_v2 = vpop.f32.mrf.mxu0  ;;  %v3332_v17 = vld [vmem:[#allocation8 + $0xf0] sm:$0xff] }
 0x178   :  { %1627 = vmatpush.bf16.msrb.mxu3 %v2745_v0  ;;  %1640 = vmatpush.bf16.msra.mxu0 %v2749_v58  ;;  %v3340_v63 = vld [vmem:[#allocation8 + $0x130] sm:$0xff]  ;;  %v3322_v0 = vld [vmem:[#allocation8 + $0xa0] sm:$0xff] }
 0x179   :  { %v3346_v58 = vld [vmem:[#allocation8 + $0x160] sm:$0xff] }
 0x17a   :  { %1602 = vmatmul.bf16.vlgmr.msrb.gmra.mxu1 %v3600_v50  ;;  %1615 = vmatmul.bf16.vlgmr.msrb.gmra.mxu2 %v3600_v50 }
 0x17b   :  { %1628 = vmatmul.bf16.vlgmr.msrb.gmra.mxu3 %v3600_v50  ;;  %1641 = vmatmul.bf16.vlgmr.msra.gmra.mxu0 %v3600_v50 }
 0x17c   :  { %v528_v3 = vpop.f32.mrf.mxu2  ;;  %2065 = vmatpush.bf16.msra.mxu2 %v3317_v18  ;;  %2052 = vmatpush.bf16.msra.mxu1 %v3309_v27  ;;  %v3327_v27 = vld [vmem:[#allocation8 + $0xc8] sm:$0xff] }
 0x17d   :  { %v541_v4 = vpop.f32.mrf.mxu3  ;;  %2078 = vmatpush.bf16.msra.mxu3 %v3325_v45  ;;  %2091 = vmatpush.bf16.msrb.mxu0 %v3333_v56 }
 0x17e   :  { %v517_v62 = vpop.f32.mrf.mxu1 }
 0x17f   :  { %v556_v5 = vpop.f32.mrf.mxu0  ;;  %v3321_v62 = vld [vmem:[#allocation8 + $0x98] sm:$0xff] }
 0x180   :  { %2066 = vmatpush.bf16.msra.mxu2 %v3316_v26  ;;  %2053 = vmatpush.bf16.msra.mxu1 %v3308_v21  ;;  %v3345_v5 = vld [vmem:[#allocation8 + $0x158] sm:$0xff] }
 0x181   :  { %2079 = vmatpush.bf16.msra.mxu3 %v3324_v49  ;;  %2092 = vmatpush.bf16.msrb.mxu0 %v3332_v17 }
 0x184   :  { %v530_v6 = vpop.f32.mrf.mxu2  ;;  %2067 = vmatpush.bf16.msra.mxu2 %v3315_v31  ;;  %2054 = vmatpush.bf16.msra.mxu1 %v3307_v35 }
 0x185   :  { %v543_v14 = vpop.f32.mrf.mxu3  ;;  %2080 = vmatpush.bf16.msra.mxu3 %v3323_v60  ;;  %v3330_v6 = vld [vmem:[#allocation8 + $0xe0] sm:$0xff] }
 0x186   :  { %v567_v51 = vpop.f32.mrf.mxu1  ;;  %v3338_v14 = vld [vmem:[#allocation8 + $0x120] sm:$0xff] }
 0x187   :  { %v846_v7 = vpop.f32.mrf.mxu0 }
 0x188   :  { %v3610_v8 = vadd.f32 %v846_v7, %v528_v3  ;;  %2068 = vmatpush.bf16.msra.mxu2 %v3314_v32  ;;  %2055 = vmatpush.bf16.msra.mxu1 %v3306_v37  ;;  %v3339_v3 = vld [vmem:[#allocation8 + $0x128] sm:$0xff]  ;;  %v3344_v7 = vld [vmem:[#allocation8 + $0x150] sm:$0xff] }
 0x189   :  { %2081 = vmatpush.bf16.msra.mxu3 %v3322_v0 }
 0x18c   :  { %v580_v9 = vpop.f32.mrf.mxu2  ;;  %2069 = vmatpush.bf16.msra.mxu2 %v3313_v36  ;;  %2056 = vmatpush.bf16.msra.mxu1 %v3305_v39 }
 0x18d   :  { %v833_v10 = vpop.f32.mrf.mxu3  ;;  %2082 = vmatpush.bf16.msra.mxu3 %v3321_v62 }
 0x18e   :  { %v3612_v11 = vadd.f32 %v833_v10, %v515_v1  ;;  %v569_v12 = vpop.f32.mrf.mxu1  ;;  %v3337_v10 = vld [vmem:[#allocation8 + $0x118] sm:$0xff] }
 0x18f   :  { %v848_v13 = vpop.f32.mrf.mxu0  ;;  %v3319_v12 = vld [vmem:[#allocation8 + $0x88] sm:$0xff] }
 0x190   :  { %2070 = vmatpush.bf16.msra.mxu2 %v3312_v38  ;;  %2057 = vmatpush.bf16.msra.mxu1 %v3304_v41  ;;  %v3343_v13 = vld [vmem:[#allocation8 + $0x148] sm:$0xff] }
 0x194   :  { %v582_v15 = vpop.f32.mrf.mxu2  ;;  %2071 = vmatpush.bf16.msra.mxu2 %v3311_v40  ;;  %2058 = vmatpush.bf16.msra.mxu1 %v3303_v47 }
 0x195   :  { %v835_v50 = vpop.f32.mrf.mxu3  ;;  %v3328_v15 = vld [vmem:[#allocation8 + $0xd0] sm:$0xff] }
 0x196   :  { %v3336_v50 = vld [vmem:[#allocation8 + $0x110] sm:$0xff] }
 0x197   :  { %v859_v16 = vpop.f32.mrf.mxu1 }
 0x198   :  { %v3614_v19 = vadd.f32 %v859_v16, %v541_v4  ;;  %2072 = vmatpush.bf16.msra.mxu2 %v3310_v44  ;;  %2059 = vmatpush.bf16.msra.mxu1 %v3302_v54 }
 0x19a   :  { %v898_v20 = vpop.f32.mrf.mxu0 }
 0x19b   :  { %v3616_v22 = vadd.f32 %v898_v20, %v580_v9  ;;  %v3329_v9 = vld [vmem:[#allocation8 + $0xd8] sm:$0xff]  ;;  %v3318_v20 = vld [vmem:[#allocation8 + $0x80] sm:$0xff] }
 0x19c   :  { %2117 = vmatpush.bf16.msrb.mxu2 %v3349_v46  ;;  %2104 = vmatpush.bf16.msrb.mxu1 %v3341_v57 }
 0x19d   :  { %v872_v23 = vpop.f32.mrf.mxu2 }
 0x19e   :  { %v3618_v24 = vadd.f32 %v872_v23, %v554_v2  ;;  %v3331_v2 = vld [vmem:[#allocation8 + $0xe8] sm:$0xff]  ;;  %v3342_v23 = vld [vmem:[#allocation8 + $0x140] sm:$0xff] }
 0x19f   :  { %v861_v29 = vpop.f32.mrf.mxu1  ;;  %2093 = vmatpush.bf16.msrb.mxu0 %v3331_v2 }
 0x1a0   :  { %v885_v25 = vpop.f32.mrf.mxu3  ;;  %2118 = vmatpush.bf16.msrb.mxu2 %v3348_v52  ;;  %2105 = vmatpush.bf16.msrb.mxu1 %v3340_v63  ;;  %v3335_v29 = vld [vmem:[#allocation8 + $0x108] sm:$0xff] }
 0x1a1   :  { %v3620_v28 = vadd.f32 %v885_v25, %v567_v51  ;;  %v3320_v51 = vld [vmem:[#allocation8 + $0x90] sm:$0xff] }
 0x1a2   :  { %v900_v30 = vpop.f32.mrf.mxu0  ;;  %2083 = vmatpush.bf16.msra.mxu3 %v3320_v51 }
 0x1a3   :  { %2094 = vmatpush.bf16.msrb.mxu0 %v3330_v6 }
 0x1a4   :  { %2119 = vmatpush.bf16.msrb.mxu2 %v3347_v61  ;;  %2106 = vmatpush.bf16.msrb.mxu1 %v3339_v3  ;;  %v3362_v3 = vld [vmem:[%s3649_s6] ss:$0 sm:$0xff] }
 0x1a5   :  { %v874_v33 = vpop.f32.mrf.mxu2 }
 0x1a6   :  { %2084 = vmatpush.bf16.msra.mxu3 %v3319_v12  ;;  %v3334_v33 = vld [vmem:[#allocation8 + $0x100] sm:$0xff] }
 0x1a7   :  { %2095 = vmatpush.bf16.msrb.mxu0 %v3329_v9 }
 0x1a8   :  { %v887_v34 = vpop.f32.mrf.mxu3  ;;  %2120 = vmatpush.bf16.msrb.mxu2 %v3346_v58  ;;  %2107 = vmatpush.bf16.msrb.mxu1 %v3338_v14 }
 0x1aa   :  { %2085 = vmatpush.bf16.msra.mxu3 %v3318_v20 }
 0x1ab   :  { %2096 = vmatpush.bf16.msrb.mxu0 %v3328_v15 }
 0x1ac   :  { %2121 = vmatpush.bf16.msrb.mxu2 %v3345_v5  ;;  %2108 = vmatpush.bf16.msrb.mxu1 %v3337_v10 }
 0x1af   :  { %2097 = vmatpush.bf16.msrb.mxu0 %v3327_v27 }
 0x1b0   :  { %2122 = vmatpush.bf16.msrb.mxu2 %v3344_v7  ;;  %2109 = vmatpush.bf16.msrb.mxu1 %v3336_v50 }
 0x1b4   :  { %2123 = vmatpush.bf16.msrb.mxu2 %v3343_v13  ;;  %2110 = vmatpush.bf16.msrb.mxu1 %v3335_v29 }
 0x1b7   :  { %v3622_v42 = vpop.f32.mrf.mxu1 }
 0x1b8   :  { %2124 = vmatpush.bf16.msrb.mxu2 %v3342_v23  ;;  %v1271_v31 = vadd.f32 %v3622_v42, %v3612_v11  ;;  %2111 = vmatpush.bf16.msrb.mxu1 %v3334_v33 }
 0x1ba   :  { %v3624_v43 = vpop.f32.mrf.mxu0 }
 0x1bb   :  { %v1274_v52 = vadd.f32 %v3624_v43, %v3618_v24 }
 0x1bd   :  { %v1215_v48 = vpop.f32.mrf.mxu2 }
 0x1be   :  { %v1272_v16 = vadd.f32 %v1215_v48, %v3610_v8  ;;  %v3326_v8 = vld [vmem:[#allocation8 + $0xc0] sm:$0xff] }
 0x1bf   :  { %v1204_v55 = vpop.f32.mrf.mxu1  ;;  %2098 = vmatpush.bf16.msrb.mxu0 %v3326_v8 }
 0x1c0   :  { %v3626_v53 = vpop.f32.mrf.mxu3 }
 0x1c1   :  { %v1273_v44 = vadd.f32 %v3626_v53, %v3614_v19 }
 0x1c2   :  { %v1243_v59 = vpop.f32.mrf.mxu0 }
 0x1c5   :  { %v1217_v1 = vpop.f32.mrf.mxu2 }
 0x1c8   :  { %v1230_v4 = vpop.f32.mrf.mxu3 }
 0x1d7   :  { %v1254_v18 = vpop.f32.mrf.mxu1 }
 0x1d8   :  { %v1275_v55 = vadd.f32 %v1254_v18, %v3620_v28 }
 0x1da   :  { %v1590_v25 = vpop.f32.mrf.mxu0 }
 0x1db   :  { %v1647_v26 = vadd.f32 %v1590_v25, %v1272_v16 }
 0x1dd   :  { %v1653_v30 = vmax.f32 %v1647_v26, 0.0  ;;  %v1267_v32 = vpop.f32.mrf.mxu2 }
 0x1de   :  { %v1276_v11 = vadd.f32 %v1267_v32, %v3616_v22 }
 0x1df   :  { %v1659_v21 = vpack.c.bf16 %v1653_v30, %v1653_v30  ;;  %v1256_v36 = vpop.f32.mrf.mxu1 }
 0x1e0   :  { %v1577_v34 = vpop.f32.mrf.mxu3 }
 0x1e1   :  { %v1646_v35 = vadd.f32 %v1577_v34, %v1271_v31  ;;  %2073 = vmatmul.bf16.vlgmr.msra.gmra.mxu2 %v1659_v21 }
 0x1e2   :  { %v1592_v37 = vpop.f32.mrf.mxu0 }
 0x1e3   :  { %v1652_v38 = vmax.f32 %v1646_v35, 0.0 }
 0x1e5   :  { %v1658_v39 = vpack.c.bf16 %v1652_v38, %v1652_v38  ;;  %v1269_v40 = vpop.f32.mrf.mxu2 }
 0x1e7   :  { %2060 = vmatmul.bf16.vlgmr.msra.gmra.mxu1 %v1658_v39 }
 0x1e8   :  { %v1579_v41 = vpop.f32.mrf.mxu3 }
 0x1f7   :  { %v1603_v42 = vpop.f32.mrf.mxu1 }
 0x1f8   :  { %v1648_v45 = vadd.f32 %v1603_v42, %v1273_v44  ;;  %v1642_v46 = vpop.f32.mrf.mxu0 }
 0x1f9   :  { %v1651_v47 = vadd.f32 %v1642_v46, %v1276_v11 }
 0x1fa   :  { %v1654_v48 = vmax.f32 %v1648_v45, 0.0 }
 0x1fb   :  { %v1657_v49 = vmax.f32 %v1651_v47, 0.0 }
 0x1fc   :  { %v1660_v54 = vpack.c.bf16 %v1654_v48, %v1654_v48 }
 0x1fd   :  { %v1663_v56 = vpack.c.bf16 %v1657_v49, %v1657_v49  ;;  %v1616_v57 = vpop.f32.mrf.mxu2 }
 0x1fe   :  { %v1649_v59 = vadd.f32 %v1616_v57, %v1274_v52  ;;  %v1629_v60 = vpop.f32.mrf.mxu3  ;;  %2086 = vmatmul.bf16.vlgmr.msra.gmra.mxu3 %v1660_v54 }
 0x1ff   :  { %v1650_v19 = vadd.f32 %v1629_v60, %v1275_v55  ;;  %2125 = vmatmul.bf16.vlgmr.msrb.gmra.mxu2 %v1663_v56  ;;  %v1605_v22 = vpop.f32.mrf.mxu1 }
 0x200   :  { %v1655_v53 = vmax.f32 %v1649_v59, 0.0  ;;  %v1644_v61 = vpop.f32.mrf.mxu0 }
 0x201   :  { %v1656_v17 = vmax.f32 %v1650_v19, 0.0 }
 0x202   :  { %v1661_v63 = vpack.c.bf16 %v1655_v53, %v1655_v53 }
 0x203   :  { %v1662_v0 = vpack.c.bf16 %v1656_v17, %v1656_v17 }
 0x204   :  { %2099 = vmatmul.bf16.vlgmr.msrb.gmra.mxu0 %v1661_v63 }
 0x205   :  { %2112 = vmatmul.bf16.vlgmr.msrb.gmra.mxu1 %v1662_v0  ;;  %v1618_v58 = vpop.f32.mrf.mxu2 }
 0x206   :  { %v1631_v24 = vpop.f32.mrf.mxu3 }
 0x264   :  { %v2061_v43 = vpop.f32.mrf.mxu1  ;;  %v2074_v1 = vpop.f32.mrf.mxu2 }
 0x265   :  { %v2062_v4 = vadd.f32 %v3362_v3, %v2061_v43 }
 0x267   :  { %v2075_v62 = vadd.f32 %v2074_v1, %v2062_v4 }
 0x26c   :  { %v2063_v28 = vpop.f32.mrf.mxu1  ;;  %v2076_v2 = vpop.f32.mrf.mxu2 }
 0x281   :  { %v2087_v5 = vpop.f32.mrf.mxu3  ;;  %v2100_v6 = vpop.f32.mrf.mxu0 }
 0x282   :  { %v2088_v14 = vadd.f32 %v2087_v5, %v2075_v62  ;;  %v2113_v51 = vpop.f32.mrf.mxu1  ;;  %v2126_v7 = vpop.f32.mrf.mxu2 }
 0x284   :  { %v2101_v9 = vadd.f32 %v2100_v6, %v2088_v14 }
 0x286   :  { %v2114_v10 = vadd.f32 %v2113_v51, %v2101_v9 }
 0x288   :  { %v2127_v12 = vadd.f32 %v2126_v7, %v2114_v10 }
 0x289   :  { %v2089_v13 = vpop.f32.mrf.mxu3  ;;  %v2102_v15 = vpop.f32.mrf.mxu0 }
 0x28a   :  { %2130 = vst [vmem:[#allocation10] sm:$0x3] %v2127_v12  ;;  %v2115_v50 = vpop.f32.mrf.mxu1  ;;  %v2128_v16 = vpop.f32.mrf.mxu2 }
 0x28b   :  { %2141 = dma.vmem_to_hbm [thread:$0]  %s2137_s28, 32, %s2139_s8, [#allocation4]  }
 0x28c   :  { %3491 = dma.done.wait [#allocation4], 32  }
 0x28d   :  { %3492 = vsyncadd [#allocation4], 4294967264 }
 0x28e   :  { %2146 = vsyncpa [#allocation3], 1 }
 0x28f   :  { %2147 = vsyncpa [#allocation6], 1 }
 0x290   :  { %2148 = vsyncpa [#allocation9], 1 }
 0x291   :  { %2149 = vsyncpa [#allocation4], 1 }

</bundles_post_ra>
